<compile_context>
chip_gen: v6e
topology: v6e:2x2x1
jax: 0.10.0
libtpu: 0.0.40
codegen_flags: <defaults>
</compile_context>

<pallas_src>
import math
import functools

import jax
import jax.numpy as jnp
from jax.experimental import pallas as pl
from jax.experimental.pallas import tpu as pltpu


# ----------------------------- in-kernel helpers -----------------------------

def _layer_norm(x, gamma, beta, eps=1e-5):
    # x: (T, D), gamma/beta: (1, D). Matches torch.nn.LayerNorm (biased variance).
    mean = jnp.mean(x, axis=-1, keepdims=True)
    var = jnp.mean((x - mean) ** 2, axis=-1, keepdims=True)
    return (x - mean) * jax.lax.rsqrt(var + eps) * gamma + beta


def _gelu_tanh(x):
    # 0.5*x*(1+tanh(sqrt(2/pi)*(x+0.044715*x^3))) — matches the module's GELU.
    c = math.sqrt(2.0 / math.pi)
    return 0.5 * x * (1.0 + jnp.tanh(c * (x + 0.044715 * x * x * x)))


def _softmax_last(x):
    m = jnp.max(x, axis=-1, keepdims=True)
    e = jnp.exp(x - m)
    return e / jnp.sum(e, axis=-1, keepdims=True)


# --------------------------------- kernel ------------------------------------

def encoder_layer_kernel(
    xq_ref, xkv_ref,
    wq_ref, bq_ref, wk_ref, bk_ref, wv_ref, bv_ref,
    wo_ref, bo_ref, g1_ref, be1_ref,
    w1_ref, b1_ref, w2_ref, b2_ref, g2_ref, be2_ref,
    out_ref, attn_ref,
    kh_sc, vh_sc,
    *, n_heads, d_k, d_v,
):
    qi = pl.program_id(1)

    # --- K/V projections: once per batch element, cached in VMEM scratch (bf16) ---
    @pl.when(qi == 0)
    def _compute_kv():
        xkv_b = xkv_ref[0].astype(jnp.bfloat16)          # (S, d_model)
        k = jnp.dot(xkv_b, wk_ref[...], preferred_element_type=jnp.float32) + bk_ref[...]
        v = jnp.dot(xkv_b, wv_ref[...], preferred_element_type=jnp.float32) + bv_ref[...]
        s = k.shape[0]
        kh_sc[...] = jnp.transpose(
            k.astype(jnp.bfloat16).reshape(s, n_heads, d_k), (1, 0, 2))
        vh_sc[...] = jnp.transpose(
            v.astype(jnp.bfloat16).reshape(s, n_heads, d_v), (1, 0, 2))

    xq = xq_ref[0]                                        # (TQ, d_model) f32 — residual
    xq_b = xq.astype(jnp.bfloat16)

    # --- Q projection for this query tile: bf16 operands, f32 accumulation ---
    q = jnp.dot(xq_b, wq_ref[...], preferred_element_type=jnp.float32) + bq_ref[...]
    tq = q.shape[0]
    qh = jnp.transpose(q.astype(jnp.bfloat16).reshape(tq, n_heads, d_k), (1, 0, 2))

    kh = kh_sc[...]                                       # (H, S, d_k) bf16
    vh = vh_sc[...]                                       # (H, S, d_v) bf16

    scale = 1.0 / math.sqrt(d_k)
    scores = jnp.einsum("hqd,hkd->hqk", qh, kh,
                        preferred_element_type=jnp.float32) * scale   # (H, TQ, S) f32
    attn = _softmax_last(scores)                                      # f32 softmax
    attn_ref[0] = attn.astype(attn_ref.dtype)

    ctx = jnp.einsum("hqk,hkd->hqd", attn.astype(jnp.bfloat16), vh,
                     preferred_element_type=jnp.float32)              # (H, TQ, d_v)
    context = jnp.transpose(ctx, (1, 0, 2)).reshape(tq, n_heads * d_v)

    # --- output projection + residual + LayerNorm (f32 elementwise) ---
    attn_out = jnp.dot(context.astype(jnp.bfloat16), wo_ref[...],
                       preferred_element_type=jnp.float32) + bo_ref[...]
    y = _layer_norm(attn_out + xq, g1_ref[...], be1_ref[...])          # (TQ, d_model)

    # --- position-wise FFN + residual + LayerNorm ---
    h1 = jnp.dot(y.astype(jnp.bfloat16), w1_ref[...],
                 preferred_element_type=jnp.float32) + b1_ref[...]
    h1 = _gelu_tanh(h1)                                                # f32 GELU
    h2 = jnp.dot(h1.astype(jnp.bfloat16), w2_ref[...],
                 preferred_element_type=jnp.float32) + b2_ref[...]
    out_ref[0] = _layer_norm(h2 + y, g2_ref[...], be2_ref[...]).astype(out_ref.dtype)


# -------------------------------- wrapper ------------------------------------

def _pick_q_tile(S):
    # Largest "nice" query tile that divides S (multiple of 8 for sublane alignment);
    # fall back to the whole sequence if S is ragged.
    for t in (512, 256, 128, 64, 32, 16, 8):
        if S % t == 0:
            return t
    return S


def encoder_layer(x, params, *, n_heads, d_k, d_v, attn_dtype=jnp.float32):
    B, S, d_model = x.shape
    tq = _pick_q_tile(S)
    n_qt = S // tq

    # Weight matrices fed to the MXU in bf16 (halves weight VMEM as well);
    # biases and LayerNorm params stay f32.
    wq = params["wq"].astype(jnp.bfloat16)
    wk = params["wk"].astype(jnp.bfloat16)
    wv = params["wv"].astype(jnp.bfloat16)
    wo = params["wo"].astype(jnp.bfloat16)
    w1 = params["w1"].astype(jnp.bfloat16)
    w2 = params["w2"].astype(jnp.bfloat16)

    kernel = functools.partial(
        encoder_layer_kernel, n_heads=n_heads, d_k=d_k, d_v=d_v
    )

    def full_spec(shape):
        # whole parameter resident in VMEM, same block for every grid step
        nd = len(shape)
        return pl.BlockSpec(shape, lambda b, qi, _nd=nd: (0,) * _nd)

    in_specs = [
        pl.BlockSpec((1, tq, d_model), lambda b, qi: (b, qi, 0)),   # query tile of x
        pl.BlockSpec((1, S, d_model), lambda b, qi: (b, 0, 0)),     # full x for K/V
        full_spec(wq.shape), full_spec(params["bq"].shape),
        full_spec(wk.shape), full_spec(params["bk"].shape),
        full_spec(wv.shape), full_spec(params["bv"].shape),
        full_spec(wo.shape), full_spec(params["bo"].shape),
        full_spec(params["g1"].shape), full_spec(params["be1"].shape),
        full_spec(w1.shape), full_spec(params["b1"].shape),
        full_spec(w2.shape), full_spec(params["b2"].shape),
        full_spec(params["g2"].shape), full_spec(params["be2"].shape),
    ]
    out_specs = (
        pl.BlockSpec((1, tq, d_model), lambda b, qi: (b, qi, 0)),
        pl.BlockSpec((1, n_heads, tq, S), lambda b, qi: (b, 0, qi, 0)),
    )
    out_shape = (
        jax.ShapeDtypeStruct((B, S, d_model), x.dtype),
        jax.ShapeDtypeStruct((B, n_heads, S, S), attn_dtype),
    )

    return pl.pallas_call(
        kernel,
        out_shape=out_shape,
        grid_spec=pltpu.PrefetchScalarGridSpec(
            num_scalar_prefetch=0,
            grid=(B, n_qt),
            in_specs=in_specs,
            out_specs=out_specs,
            scratch_shapes=[
                pltpu.VMEM((n_heads, S, d_k), jnp.bfloat16),   # cached K heads
                pltpu.VMEM((n_heads, S, d_v), jnp.bfloat16),   # cached V heads
            ],
        ),
        compiler_params=pltpu.CompilerParams(
            # Batch axis sharded across cores; query-tile axis sequential so the
            # per-batch K/V scratch computed at qi==0 is valid for all later tiles.
            dimension_semantics=("parallel", "arbitrary"),
            vmem_limit_bytes=48 * 1024 * 1024,   # explicit budget, safe on v5e/v6e/v7x
        ),
    )(
        x, x,
        wq, params["bq"], wk, params["bk"],
        wv, params["bv"], wo, params["bo"],
        params["g1"], params["be1"],
        w1, params["b1"], w2, params["b2"],
        params["g2"], params["be2"],
    )


# ---------------------------- pure-JAX reference ------------------------------

def encoder_layer_ref(x, p, *, n_heads, d_k, d_v):
    B, S, D = x.shape
    q = x @ p["wq"] + p["bq"][0]
    k = x @ p["wk"] + p["bk"][0]
    v = x @ p["wv"] + p["bv"][0]
    q = q.reshape(B, S, n_heads, d_k).transpose(0, 2, 1, 3)
    k = k.reshape(B, S, n_heads, d_k).transpose(0, 2, 1, 3)
    v = v.reshape(B, S, n_heads, d_v).transpose(0, 2, 1, 3)
    scores = jnp.einsum("bhqd,bhkd->bhqk", q, k) / math.sqrt(d_k)
    attn = jax.nn.softmax(scores, axis=-1)
    ctx = jnp.einsum("bhqk,bhkd->bhqd", attn, v)
    ctx = ctx.transpose(0, 2, 1, 3).reshape(B, S, n_heads * d_v)
    o = ctx @ p["wo"] + p["bo"][0]

    def ln(z, g, b, eps=1e-5):
        m = jnp.mean(z, -1, keepdims=True)
        var = jnp.mean((z - m) ** 2, -1, keepdims=True)
        return (z - m) * jax.lax.rsqrt(var + eps) * g[0] + b[0]

    y = ln(o + x, p["g1"], p["be1"])
    c = math.sqrt(2.0 / math.pi)
    h1 = y @ p["w1"] + p["b1"][0]
    h1 = 0.5 * h1 * (1.0 + jnp.tanh(c * (h1 + 0.044715 * h1 ** 3)))
    h2 = h1 @ p["w2"] + p["b2"][0]
    return ln(h2 + y, p["g2"], p["be2"]), attn


# ---------------------------------- main --------------------------------------

if __name__ == "__main__":
    B, S = 2, 8
    d_model, d_ff, d_k, d_v, n_heads = 32, 64, 16, 16, 4

    key = jax.random.PRNGKey(0)
    keys = jax.random.split(key, 8)

    def init(k, shape, scale=0.1):
        return (scale * jax.random.normal(k, shape)).astype(jnp.float32)

    # Linear weights stored pre-transposed as (in, out) so the kernel does x @ W.
    params = {
        "wq": init(keys[0], (d_model, d_k * n_heads)),
        "bq": init(keys[1], (1, d_k * n_heads)),
        "wk": init(keys[2], (d_model, d_k * n_heads)),
        "bk": init(keys[3], (1, d_k * n_heads)),
        "wv": init(keys[4], (d_model, d_v * n_heads)),
        "bv": init(keys[5], (1, d_v * n_heads)),
        "wo": init(keys[6], (n_heads * d_v, d_model)),
        "bo": init(keys[7], (1, d_model)),
        "g1": jnp.ones((1, d_model), jnp.float32),
        "be1": jnp.zeros((1, d_model), jnp.float32),
        "w1": init(jax.random.PRNGKey(1), (d_model, d_ff)),
        "b1": init(jax.random.PRNGKey(2), (1, d_ff)),
        "w2": init(jax.random.PRNGKey(3), (d_ff, d_model)),
        "b2": init(jax.random.PRNGKey(4), (1, d_model)),
        "g2": jnp.ones((1, d_model), jnp.float32),
        "be2": jnp.zeros((1, d_model), jnp.float32),
    }

    x = jax.random.normal(jax.random.PRNGKey(5), (B, S, d_model), jnp.float32)

    out, attn = encoder_layer(x, params, n_heads=n_heads, d_k=d_k, d_v=d_v)
    out, attn = jax.block_until_ready((out, attn))

    out_ref, attn_ref = encoder_layer_ref(x, params, n_heads=n_heads, d_k=d_k, d_v=d_v)
    assert out.shape == (B, S, d_model) and attn.shape == (B, n_heads, S, S)
    # Tolerances relaxed vs the f32 reference because MXU operands are bf16.
    assert jnp.allclose(out, out_ref, atol=5e-2, rtol=5e-2)
    assert jnp.allclose(attn, attn_ref, atol=5e-2, rtol=5e-2)

    print("KERNEL_OK")
</pallas_src>

<mosaic_0001>
module attributes {stable_mosaic.version = 11 : i64} {
  func.func @encoder_layer_kernel(%arg0: i32, %arg1: i32, %arg2: memref<1x8x32xf32, #tpu.memory_space<vmem>>, %arg3: memref<1x8x32xf32, #tpu.memory_space<vmem>>, %arg4: memref<32x64xbf16, #tpu.memory_space<vmem>>, %arg5: memref<1x64xf32, #tpu.memory_space<vmem>>, %arg6: memref<32x64xbf16, #tpu.memory_space<vmem>>, %arg7: memref<1x64xf32, #tpu.memory_space<vmem>>, %arg8: memref<32x64xbf16, #tpu.memory_space<vmem>>, %arg9: memref<1x64xf32, #tpu.memory_space<vmem>>, %arg10: memref<64x32xbf16, #tpu.memory_space<vmem>>, %arg11: memref<1x32xf32, #tpu.memory_space<vmem>>, %arg12: memref<1x32xf32, #tpu.memory_space<vmem>>, %arg13: memref<1x32xf32, #tpu.memory_space<vmem>>, %arg14: memref<32x64xbf16, #tpu.memory_space<vmem>>, %arg15: memref<1x64xf32, #tpu.memory_space<vmem>>, %arg16: memref<64x32xbf16, #tpu.memory_space<vmem>>, %arg17: memref<1x32xf32, #tpu.memory_space<vmem>>, %arg18: memref<1x32xf32, #tpu.memory_space<vmem>>, %arg19: memref<1x32xf32, #tpu.memory_space<vmem>>, %arg20: memref<1x8x32xf32, #tpu.memory_space<vmem>>, %arg21: memref<1x4x8x8xf32, #tpu.memory_space<vmem>>, %arg22: memref<4x8x16xbf16, #tpu.memory_space<vmem>>, %arg23: memref<4x8x16xbf16, #tpu.memory_space<vmem>>) attributes {dimension_semantics = [#tpu.dimension_semantics<parallel>, #tpu.dimension_semantics<arbitrary>], iteration_bounds = array<i64: 2, 1>, scalar_prefetch = 0 : i64, scratch_operands = 2 : i64, tpu.core_type = #tpu.core_type<tc>, window_params = [{transform_indices = @transform_0, window_bounds = array<i64: 1, 8, 32>}, {transform_indices = @transform_1, window_bounds = array<i64: 1, 8, 32>}, {pipeline_mode = #tpu.pipeline_mode<synchronous>, transform_indices = @transform_2, window_bounds = array<i64: 32, 64>}, {pipeline_mode = #tpu.pipeline_mode<synchronous>, transform_indices = @transform_3, window_bounds = array<i64: 1, 64>}, {pipeline_mode = #tpu.pipeline_mode<synchronous>, transform_indices = @transform_4, window_bounds = array<i64: 32, 64>}, {pipeline_mode = #tpu.pipeline_mode<synchronous>, transform_indices = @transform_5, window_bounds = array<i64: 1, 64>}, {pipeline_mode = #tpu.pipeline_mode<synchronous>, transform_indices = @transform_6, window_bounds = array<i64: 32, 64>}, {pipeline_mode = #tpu.pipeline_mode<synchronous>, transform_indices = @transform_7, window_bounds = array<i64: 1, 64>}, {pipeline_mode = #tpu.pipeline_mode<synchronous>, transform_indices = @transform_8, window_bounds = array<i64: 64, 32>}, {pipeline_mode = #tpu.pipeline_mode<synchronous>, transform_indices = @transform_9, window_bounds = array<i64: 1, 32>}, {pipeline_mode = #tpu.pipeline_mode<synchronous>, transform_indices = @transform_10, window_bounds = array<i64: 1, 32>}, {pipeline_mode = #tpu.pipeline_mode<synchronous>, transform_indices = @transform_11, window_bounds = array<i64: 1, 32>}, {pipeline_mode = #tpu.pipeline_mode<synchronous>, transform_indices = @transform_12, window_bounds = array<i64: 32, 64>}, {pipeline_mode = #tpu.pipeline_mode<synchronous>, transform_indices = @transform_13, window_bounds = array<i64: 1, 64>}, {pipeline_mode = #tpu.pipeline_mode<synchronous>, transform_indices = @transform_14, window_bounds = array<i64: 64, 32>}, {pipeline_mode = #tpu.pipeline_mode<synchronous>, transform_indices = @transform_15, window_bounds = array<i64: 1, 32>}, {pipeline_mode = #tpu.pipeline_mode<synchronous>, transform_indices = @transform_16, window_bounds = array<i64: 1, 32>}, {pipeline_mode = #tpu.pipeline_mode<synchronous>, transform_indices = @transform_17, window_bounds = array<i64: 1, 32>}, {transform_indices = @transform_18, window_bounds = array<i64: 1, 8, 32>}, {transform_indices = @transform_19, window_bounds = array<i64: 1, 4, 8, 8>}]} {
    %c0_i32 = arith.constant 0 : i32
    %0 = arith.cmpi eq, %arg1, %c0_i32 : i32
    %1 = arith.extui %0 : i1 to i32
    %c0_i32_0 = arith.constant 0 : i32
    %2 = arith.cmpi ne, %1, %c0_i32_0 : i32
    scf.if %2 {
      %c0_62 = arith.constant 0 : index
      %c0_63 = arith.constant 0 : index
      %c0_64 = arith.constant 0 : index
      %119 = vector.load %arg3[%c0_62, %c0_63, %c0_64] : memref<1x8x32xf32, #tpu.memory_space<vmem>>, vector<1x8x32xf32>
      %120 = vector.shape_cast %119 : vector<1x8x32xf32> to vector<8x32xf32>
      %121 = arith.truncf %120 : vector<8x32xf32> to vector<8x32xbf16>
      %c0_65 = arith.constant 0 : index
      %c0_66 = arith.constant 0 : index
      %122 = vector.load %arg6[%c0_65, %c0_66] : memref<32x64xbf16, #tpu.memory_space<vmem>>, vector<32x64xbf16>
      %cst_67 = arith.constant dense<0.000000e+00> : vector<8x64xf32>
      %123 = tpu.matmul %121, %122, %cst_67 {dimension_numbers = #tpu.dot_dimension_numbers<[1], [0], [0], [1], [0, 0, 1, 1], [], []>} : vector<8x32xbf16>, vector<32x64xbf16>, vector<8x64xf32> -> vector<8x64xf32>
      %c0_68 = arith.constant 0 : index
      %c0_69 = arith.constant 0 : index
      %124 = vector.load %arg7[%c0_68, %c0_69] : memref<1x64xf32, #tpu.memory_space<vmem>>, vector<1x64xf32>
      %125 = vector.broadcast %124 : vector<1x64xf32> to vector<8x64xf32>
      %126 = arith.addf %123, %125 : vector<8x64xf32>
      %c0_70 = arith.constant 0 : index
      %c0_71 = arith.constant 0 : index
      %127 = vector.load %arg8[%c0_70, %c0_71] : memref<32x64xbf16, #tpu.memory_space<vmem>>, vector<32x64xbf16>
      %cst_72 = arith.constant dense<0.000000e+00> : vector<8x64xf32>
      %128 = tpu.matmul %121, %127, %cst_72 {dimension_numbers = #tpu.dot_dimension_numbers<[1], [0], [0], [1], [0, 0, 1, 1], [], []>} : vector<8x32xbf16>, vector<32x64xbf16>, vector<8x64xf32> -> vector<8x64xf32>
      %c0_73 = arith.constant 0 : index
      %c0_74 = arith.constant 0 : index
      %129 = vector.load %arg9[%c0_73, %c0_74] : memref<1x64xf32, #tpu.memory_space<vmem>>, vector<1x64xf32>
      %130 = vector.broadcast %129 : vector<1x64xf32> to vector<8x64xf32>
      %131 = arith.addf %128, %130 : vector<8x64xf32>
      %132 = arith.truncf %126 : vector<8x64xf32> to vector<8x64xbf16>
      %133 = vector.shape_cast %132 : vector<8x64xbf16> to vector<8x4x16xbf16>
      %134 = tpu.transpose %133, [1, 0, 2] : vector<8x4x16xbf16> -> vector<4x8x16xbf16>
      %c0_75 = arith.constant 0 : index
      %c0_76 = arith.constant 0 : index
      %c0_77 = arith.constant 0 : index
      %135 = vector.load %arg22[%c0_75, %c0_76, %c0_77] : memref<4x8x16xbf16, #tpu.memory_space<vmem>>, vector<4x8x16xbf16>
      tpu.vector_store %arg22[%c0_75, %c0_76, %c0_77], %134 {strides = array<i32>} : memref<4x8x16xbf16, #tpu.memory_space<vmem>>, vector<4x8x16xbf16>,
      %136 = arith.truncf %131 : vector<8x64xf32> to vector<8x64xbf16>
      %137 = vector.shape_cast %136 : vector<8x64xbf16> to vector<8x4x16xbf16>
      %138 = tpu.transpose %137, [1, 0, 2] : vector<8x4x16xbf16> -> vector<4x8x16xbf16>
      %c0_78 = arith.constant 0 : index
      %c0_79 = arith.constant 0 : index
      %c0_80 = arith.constant 0 : index
      %139 = vector.load %arg23[%c0_78, %c0_79, %c0_80] : memref<4x8x16xbf16, #tpu.memory_space<vmem>>, vector<4x8x16xbf16>
      tpu.vector_store %arg23[%c0_78, %c0_79, %c0_80], %138 {strides = array<i32>} : memref<4x8x16xbf16, #tpu.memory_space<vmem>>, vector<4x8x16xbf16>,
    } else {
    }
    %c0 = arith.constant 0 : index
    %c0_1 = arith.constant 0 : index
    %c0_2 = arith.constant 0 : index
    %3 = vector.load %arg2[%c0, %c0_1, %c0_2] : memref<1x8x32xf32, #tpu.memory_space<vmem>>, vector<1x8x32xf32>
    %4 = vector.shape_cast %3 : vector<1x8x32xf32> to vector<8x32xf32>
    %5 = arith.truncf %4 : vector<8x32xf32> to vector<8x32xbf16>
    %c0_3 = arith.constant 0 : index
    %c0_4 = arith.constant 0 : index
    %6 = vector.load %arg4[%c0_3, %c0_4] : memref<32x64xbf16, #tpu.memory_space<vmem>>, vector<32x64xbf16>
    %cst = arith.constant dense<0.000000e+00> : vector<8x64xf32>
    %7 = tpu.matmul %5, %6, %cst {dimension_numbers = #tpu.dot_dimension_numbers<[1], [0], [0], [1], [0, 0, 1, 1], [], []>} : vector<8x32xbf16>, vector<32x64xbf16>, vector<8x64xf32> -> vector<8x64xf32>
    %c0_5 = arith.constant 0 : index
    %c0_6 = arith.constant 0 : index
    %8 = vector.load %arg5[%c0_5, %c0_6] : memref<1x64xf32, #tpu.memory_space<vmem>>, vector<1x64xf32>
    %9 = vector.broadcast %8 : vector<1x64xf32> to vector<8x64xf32>
    %10 = arith.addf %7, %9 : vector<8x64xf32>
    %11 = arith.truncf %10 : vector<8x64xf32> to vector<8x64xbf16>
    %12 = vector.shape_cast %11 : vector<8x64xbf16> to vector<8x4x16xbf16>
    %13 = tpu.transpose %12, [1, 0, 2] : vector<8x4x16xbf16> -> vector<4x8x16xbf16>
    %c0_7 = arith.constant 0 : index
    %c0_8 = arith.constant 0 : index
    %c0_9 = arith.constant 0 : index
    %14 = vector.load %arg22[%c0_7, %c0_8, %c0_9] : memref<4x8x16xbf16, #tpu.memory_space<vmem>>, vector<4x8x16xbf16>
    %c0_10 = arith.constant 0 : index
    %c0_11 = arith.constant 0 : index
    %c0_12 = arith.constant 0 : index
    %15 = vector.load %arg23[%c0_10, %c0_11, %c0_12] : memref<4x8x16xbf16, #tpu.memory_space<vmem>>, vector<4x8x16xbf16>
    "tpu.trace_start"() <{level = 10 : i32, message = "hqd,hkd->hqk"}> : () -> ()
    %cst_13 = arith.constant dense<0.000000e+00> : vector<4x8x8xf32>
    %16 = tpu.matmul %13, %14, %cst_13 {dimension_numbers = #tpu.dot_dimension_numbers<[2], [2], [1], [1], [0, 0, 0, 1, 1, 1], [0], [0]>} : vector<4x8x16xbf16>, vector<4x8x16xbf16>, vector<4x8x8xf32> -> vector<4x8x8xf32>
    "tpu.trace_stop"() : () -> ()
    %cst_14 = arith.constant 2.500000e-01 : f32
    %17 = vector.broadcast %cst_14 : f32 to vector<4x8x8xf32>
    %18 = arith.mulf %16, %17 : vector<4x8x8xf32>
    %cst_15 = arith.constant dense<0xFF800000> : vector<4x8xf32>
    %19 = vector.multi_reduction <maximumf>, %18, %cst_15 [2] : vector<4x8x8xf32> to vector<4x8xf32>
    %20 = vector.shape_cast %19 : vector<4x8xf32> to vector<4x8x1xf32>
    %21 = vector.broadcast %20 : vector<4x8x1xf32> to vector<4x8x8xf32>
    %22 = arith.subf %18, %21 : vector<4x8x8xf32>
    %23 = math.exp %22 : vector<4x8x8xf32>
    %cst_16 = arith.constant dense<0.000000e+00> : vector<4x8xf32>
    %24 = vector.multi_reduction <add>, %23, %cst_16 [2] : vector<4x8x8xf32> to vector<4x8xf32>
    %25 = vector.shape_cast %24 : vector<4x8xf32> to vector<4x8x1xf32>
    %26 = vector.broadcast %25 : vector<4x8x1xf32> to vector<4x8x8xf32>
    %27 = arith.divf %23, %26 : vector<4x8x8xf32>
    %c0_17 = arith.constant 0 : index
    %c0_18 = arith.constant 0 : index
    %c0_19 = arith.constant 0 : index
    %c0_20 = arith.constant 0 : index
    %28 = vector.load %arg21[%c0_17, %c0_18, %c0_19, %c0_20] : memref<1x4x8x8xf32, #tpu.memory_space<vmem>>, vector<1x4x8x8xf32>
    %29 = vector.shape_cast %28 : vector<1x4x8x8xf32> to vector<4x8x8xf32>
    %30 = vector.shape_cast %27 : vector<4x8x8xf32> to vector<1x4x8x8xf32>
    tpu.vector_store %arg21[%c0_17, %c0_18, %c0_19, %c0_20], %30 {strides = array<i32>} : memref<1x4x8x8xf32, #tpu.memory_space<vmem>>, vector<1x4x8x8xf32>,
    %31 = arith.truncf %27 : vector<4x8x8xf32> to vector<4x8x8xbf16>
    "tpu.trace_start"() <{level = 10 : i32, message = "hqk,hkd->hqd"}> : () -> ()
    %cst_21 = arith.constant dense<0.000000e+00> : vector<4x8x16xf32>
    %32 = tpu.matmul %31, %15, %cst_21 {dimension_numbers = #tpu.dot_dimension_numbers<[2], [1], [1], [2], [0, 0, 0, 1, 1, 2], [0], [0]>} : vector<4x8x8xbf16>, vector<4x8x16xbf16>, vector<4x8x16xf32> -> vector<4x8x16xf32>
    "tpu.trace_stop"() : () -> ()
    %33 = tpu.transpose %32, [1, 0, 2] : vector<4x8x16xf32> -> vector<8x4x16xf32>
    %34 = vector.shape_cast %33 : vector<8x4x16xf32> to vector<8x64xf32>
    %35 = arith.truncf %34 : vector<8x64xf32> to vector<8x64xbf16>
    %c0_22 = arith.constant 0 : index
    %c0_23 = arith.constant 0 : index
    %36 = vector.load %arg10[%c0_22, %c0_23] : memref<64x32xbf16, #tpu.memory_space<vmem>>, vector<64x32xbf16>
    %cst_24 = arith.constant dense<0.000000e+00> : vector<8x32xf32>
    %37 = tpu.matmul %35, %36, %cst_24 {dimension_numbers = #tpu.dot_dimension_numbers<[1], [0], [0], [1], [0, 0, 1, 1], [], []>} : vector<8x64xbf16>, vector<64x32xbf16>, vector<8x32xf32> -> vector<8x32xf32>
    %c0_25 = arith.constant 0 : index
    %c0_26 = arith.constant 0 : index
    %38 = vector.load %arg11[%c0_25, %c0_26] : memref<1x32xf32, #tpu.memory_space<vmem>>, vector<1x32xf32>
    %39 = vector.broadcast %38 : vector<1x32xf32> to vector<8x32xf32>
    %40 = arith.addf %37, %39 : vector<8x32xf32>
    %41 = arith.addf %40, %4 : vector<8x32xf32>
    %c0_27 = arith.constant 0 : index
    %c0_28 = arith.constant 0 : index
    %42 = vector.load %arg12[%c0_27, %c0_28] : memref<1x32xf32, #tpu.memory_space<vmem>>, vector<1x32xf32>
    %c0_29 = arith.constant 0 : index
    %c0_30 = arith.constant 0 : index
    %43 = vector.load %arg13[%c0_29, %c0_30] : memref<1x32xf32, #tpu.memory_space<vmem>>, vector<1x32xf32>
    %cst_31 = arith.constant dense<0.000000e+00> : vector<8xf32>
    %44 = vector.multi_reduction <add>, %41, %cst_31 [1] : vector<8x32xf32> to vector<8xf32>
    %45 = vector.shape_cast %44 : vector<8xf32> to vector<8x1xf32>
    %cst_32 = arith.constant 3.200000e+01 : f32
    %46 = vector.broadcast %cst_32 : f32 to vector<8x1xf32>
    %47 = arith.divf %45, %46 : vector<8x1xf32>
    %48 = vector.broadcast %47 : vector<8x1xf32> to vector<8x32xf32>
    %49 = arith.subf %41, %48 : vector<8x32xf32>
    %50 = arith.mulf %49, %49 : vector<8x32xf32>
    %cst_33 = arith.constant dense<0.000000e+00> : vector<8xf32>
    %51 = vector.multi_reduction <add>, %50, %cst_33 [1] : vector<8x32xf32> to vector<8xf32>
    %52 = vector.shape_cast %51 : vector<8xf32> to vector<8x1xf32>
    %cst_34 = arith.constant 3.200000e+01 : f32
    %53 = vector.broadcast %cst_34 : f32 to vector<8x1xf32>
    %54 = arith.divf %52, %53 : vector<8x1xf32>
    %55 = vector.broadcast %47 : vector<8x1xf32> to vector<8x32xf32>
    %56 = arith.subf %41, %55 : vector<8x32xf32>
    %cst_35 = arith.constant 9.99999974E-6 : f32
    %57 = vector.broadcast %cst_35 : f32 to vector<8x1xf32>
    %58 = arith.addf %54, %57 : vector<8x1xf32>
    %59 = math.rsqrt %58 : vector<8x1xf32>
    %60 = vector.broadcast %59 : vector<8x1xf32> to vector<8x32xf32>
    %61 = arith.mulf %56, %60 : vector<8x32xf32>
    %62 = vector.broadcast %42 : vector<1x32xf32> to vector<8x32xf32>
    %63 = arith.mulf %61, %62 : vector<8x32xf32>
    %64 = vector.broadcast %43 : vector<1x32xf32> to vector<8x32xf32>
    %65 = arith.addf %63, %64 : vector<8x32xf32>
    %66 = arith.truncf %65 : vector<8x32xf32> to vector<8x32xbf16>
    %c0_36 = arith.constant 0 : index
    %c0_37 = arith.constant 0 : index
    %67 = vector.load %arg14[%c0_36, %c0_37] : memref<32x64xbf16, #tpu.memory_space<vmem>>, vector<32x64xbf16>
    %cst_38 = arith.constant dense<0.000000e+00> : vector<8x64xf32>
    %68 = tpu.matmul %66, %67, %cst_38 {dimension_numbers = #tpu.dot_dimension_numbers<[1], [0], [0], [1], [0, 0, 1, 1], [], []>} : vector<8x32xbf16>, vector<32x64xbf16>, vector<8x64xf32> -> vector<8x64xf32>
    %c0_39 = arith.constant 0 : index
    %c0_40 = arith.constant 0 : index
    %69 = vector.load %arg15[%c0_39, %c0_40] : memref<1x64xf32, #tpu.memory_space<vmem>>, vector<1x64xf32>
    %70 = vector.broadcast %69 : vector<1x64xf32> to vector<8x64xf32>
    %71 = arith.addf %68, %70 : vector<8x64xf32>
    %cst_41 = arith.constant 5.000000e-01 : f32
    %72 = vector.broadcast %cst_41 : f32 to vector<8x64xf32>
    %73 = arith.mulf %72, %71 : vector<8x64xf32>
    %cst_42 = arith.constant 4.471500e-02 : f32
    %74 = vector.broadcast %cst_42 : f32 to vector<8x64xf32>
    %75 = arith.mulf %74, %71 : vector<8x64xf32>
    %76 = arith.mulf %75, %71 : vector<8x64xf32>
    %77 = arith.mulf %76, %71 : vector<8x64xf32>
    %78 = arith.addf %71, %77 : vector<8x64xf32>
    %cst_43 = arith.constant 0.797884583 : f32
    %79 = vector.broadcast %cst_43 : f32 to vector<8x64xf32>
    %80 = arith.mulf %79, %78 : vector<8x64xf32>
    %81 = math.tanh %80 : vector<8x64xf32>
    %cst_44 = arith.constant 1.000000e+00 : f32
    %82 = vector.broadcast %cst_44 : f32 to vector<8x64xf32>
    %83 = arith.addf %82, %81 : vector<8x64xf32>
    %84 = arith.mulf %73, %83 : vector<8x64xf32>
    %85 = arith.truncf %84 : vector<8x64xf32> to vector<8x64xbf16>
    %c0_45 = arith.constant 0 : index
    %c0_46 = arith.constant 0 : index
    %86 = vector.load %arg16[%c0_45, %c0_46] : memref<64x32xbf16, #tpu.memory_space<vmem>>, vector<64x32xbf16>
    %cst_47 = arith.constant dense<0.000000e+00> : vector<8x32xf32>
    %87 = tpu.matmul %85, %86, %cst_47 {dimension_numbers = #tpu.dot_dimension_numbers<[1], [0], [0], [1], [0, 0, 1, 1], [], []>} : vector<8x64xbf16>, vector<64x32xbf16>, vector<8x32xf32> -> vector<8x32xf32>
    %c0_48 = arith.constant 0 : index
    %c0_49 = arith.constant 0 : index
    %88 = vector.load %arg17[%c0_48, %c0_49] : memref<1x32xf32, #tpu.memory_space<vmem>>, vector<1x32xf32>
    %89 = vector.broadcast %88 : vector<1x32xf32> to vector<8x32xf32>
    %90 = arith.addf %87, %89 : vector<8x32xf32>
    %91 = arith.addf %90, %65 : vector<8x32xf32>
    %c0_50 = arith.constant 0 : index
    %c0_51 = arith.constant 0 : index
    %92 = vector.load %arg18[%c0_50, %c0_51] : memref<1x32xf32, #tpu.memory_space<vmem>>, vector<1x32xf32>
    %c0_52 = arith.constant 0 : index
    %c0_53 = arith.constant 0 : index
    %93 = vector.load %arg19[%c0_52, %c0_53] : memref<1x32xf32, #tpu.memory_space<vmem>>, vector<1x32xf32>
    %cst_54 = arith.constant dense<0.000000e+00> : vector<8xf32>
    %94 = vector.multi_reduction <add>, %91, %cst_54 [1] : vector<8x32xf32> to vector<8xf32>
    %95 = vector.shape_cast %94 : vector<8xf32> to vector<8x1xf32>
    %cst_55 = arith.constant 3.200000e+01 : f32
    %96 = vector.broadcast %cst_55 : f32 to vector<8x1xf32>
    %97 = arith.divf %95, %96 : vector<8x1xf32>
    %98 = vector.broadcast %97 : vector<8x1xf32> to vector<8x32xf32>
    %99 = arith.subf %91, %98 : vector<8x32xf32>
    %100 = arith.mulf %99, %99 : vector<8x32xf32>
    %cst_56 = arith.constant dense<0.000000e+00> : vector<8xf32>
    %101 = vector.multi_reduction <add>, %100, %cst_56 [1] : vector<8x32xf32> to vector<8xf32>
    %102 = vector.shape_cast %101 : vector<8xf32> to vector<8x1xf32>
    %cst_57 = arith.constant 3.200000e+01 : f32
    %103 = vector.broadcast %cst_57 : f32 to vector<8x1xf32>
    %104 = arith.divf %102, %103 : vector<8x1xf32>
    %105 = vector.broadcast %97 : vector<8x1xf32> to vector<8x32xf32>
    %106 = arith.subf %91, %105 : vector<8x32xf32>
    %cst_58 = arith.constant 9.99999974E-6 : f32
    %107 = vector.broadcast %cst_58 : f32 to vector<8x1xf32>
    %108 = arith.addf %104, %107 : vector<8x1xf32>
    %109 = math.rsqrt %108 : vector<8x1xf32>
    %110 = vector.broadcast %109 : vector<8x1xf32> to vector<8x32xf32>
    %111 = arith.mulf %106, %110 : vector<8x32xf32>
    %112 = vector.broadcast %92 : vector<1x32xf32> to vector<8x32xf32>
    %113 = arith.mulf %111, %112 : vector<8x32xf32>
    %114 = vector.broadcast %93 : vector<1x32xf32> to vector<8x32xf32>
    %115 = arith.addf %113, %114 : vector<8x32xf32>
    %c0_59 = arith.constant 0 : index
    %c0_60 = arith.constant 0 : index
    %c0_61 = arith.constant 0 : index
    %116 = vector.load %arg20[%c0_59, %c0_60, %c0_61] : memref<1x8x32xf32, #tpu.memory_space<vmem>>, vector<1x8x32xf32>
    %117 = vector.shape_cast %116 : vector<1x8x32xf32> to vector<8x32xf32>
    %118 = vector.shape_cast %115 : vector<8x32xf32> to vector<1x8x32xf32>
    tpu.vector_store %arg20[%c0_59, %c0_60, %c0_61], %118 {strides = array<i32>} : memref<1x8x32xf32, #tpu.memory_space<vmem>>, vector<1x8x32xf32>,
    return
  }
  func.func @transform_0(%arg0: i32, %arg1: i32) -> (i32, i32, i32) {
    %c0_i32 = arith.constant 0 : i32
    %c0_i32_0 = arith.constant 0 : i32
    return %arg0, %arg1, %c0_i32 : i32, i32, i32
  }
  func.func @transform_1(%arg0: i32, %arg1: i32) -> (i32, i32, i32) {
    %c0_i32 = arith.constant 0 : i32
    %c0_i32_0 = arith.constant 0 : i32
    %c0_i32_1 = arith.constant 0 : i32
    return %arg0, %c0_i32, %c0_i32_0 : i32, i32, i32
  }
  func.func @transform_2(%arg0: i32, %arg1: i32) -> (i32, i32) {
    %c0_i32 = arith.constant 0 : i32
    %c0_i32_0 = arith.constant 0 : i32
    %c0_i32_1 = arith.constant 0 : i32
    return %c0_i32, %c0_i32_0 : i32, i32
  }
  func.func @transform_3(%arg0: i32, %arg1: i32) -> (i32, i32) {
    %c0_i32 = arith.constant 0 : i32
    %c0_i32_0 = arith.constant 0 : i32
    %c0_i32_1 = arith.constant 0 : i32
    return %c0_i32, %c0_i32_0 : i32, i32
  }
  func.func @transform_4(%arg0: i32, %arg1: i32) -> (i32, i32) {
    %c0_i32 = arith.constant 0 : i32
    %c0_i32_0 = arith.constant 0 : i32
    %c0_i32_1 = arith.constant 0 : i32
    return %c0_i32, %c0_i32_0 : i32, i32
  }
  func.func @transform_5(%arg0: i32, %arg1: i32) -> (i32, i32) {
    %c0_i32 = arith.constant 0 : i32
    %c0_i32_0 = arith.constant 0 : i32
    %c0_i32_1 = arith.constant 0 : i32
    return %c0_i32, %c0_i32_0 : i32, i32
  }
  func.func @transform_6(%arg0: i32, %arg1: i32) -> (i32, i32) {
    %c0_i32 = arith.constant 0 : i32
    %c0_i32_0 = arith.constant 0 : i32
    %c0_i32_1 = arith.constant 0 : i32
    return %c0_i32, %c0_i32_0 : i32, i32
  }
  func.func @transform_7(%arg0: i32, %arg1: i32) -> (i32, i32) {
    %c0_i32 = arith.constant 0 : i32
    %c0_i32_0 = arith.constant 0 : i32
    %c0_i32_1 = arith.constant 0 : i32
    return %c0_i32, %c0_i32_0 : i32, i32
  }
  func.func @transform_8(%arg0: i32, %arg1: i32) -> (i32, i32) {
    %c0_i32 = arith.constant 0 : i32
    %c0_i32_0 = arith.constant 0 : i32
    %c0_i32_1 = arith.constant 0 : i32
    return %c0_i32, %c0_i32_0 : i32, i32
  }
  func.func @transform_9(%arg0: i32, %arg1: i32) -> (i32, i32) {
    %c0_i32 = arith.constant 0 : i32
    %c0_i32_0 = arith.constant 0 : i32
    %c0_i32_1 = arith.constant 0 : i32
    return %c0_i32, %c0_i32_0 : i32, i32
  }
  func.func @transform_10(%arg0: i32, %arg1: i32) -> (i32, i32) {
    %c0_i32 = arith.constant 0 : i32
    %c0_i32_0 = arith.constant 0 : i32
    %c0_i32_1 = arith.constant 0 : i32
    return %c0_i32, %c0_i32_0 : i32, i32
  }
  func.func @transform_11(%arg0: i32, %arg1: i32) -> (i32, i32) {
    %c0_i32 = arith.constant 0 : i32
    %c0_i32_0 = arith.constant 0 : i32
    %c0_i32_1 = arith.constant 0 : i32
    return %c0_i32, %c0_i32_0 : i32, i32
  }
  func.func @transform_12(%arg0: i32, %arg1: i32) -> (i32, i32) {
    %c0_i32 = arith.constant 0 : i32
    %c0_i32_0 = arith.constant 0 : i32
    %c0_i32_1 = arith.constant 0 : i32
    return %c0_i32, %c0_i32_0 : i32, i32
  }
  func.func @transform_13(%arg0: i32, %arg1: i32) -> (i32, i32) {
    %c0_i32 = arith.constant 0 : i32
    %c0_i32_0 = arith.constant 0 : i32
    %c0_i32_1 = arith.constant 0 : i32
    return %c0_i32, %c0_i32_0 : i32, i32
  }
  func.func @transform_14(%arg0: i32, %arg1: i32) -> (i32, i32) {
    %c0_i32 = arith.constant 0 : i32
    %c0_i32_0 = arith.constant 0 : i32
    %c0_i32_1 = arith.constant 0 : i32
    return %c0_i32, %c0_i32_0 : i32, i32
  }
  func.func @transform_15(%arg0: i32, %arg1: i32) -> (i32, i32) {
    %c0_i32 = arith.constant 0 : i32
    %c0_i32_0 = arith.constant 0 : i32
    %c0_i32_1 = arith.constant 0 : i32
    return %c0_i32, %c0_i32_0 : i32, i32
  }
  func.func @transform_16(%arg0: i32, %arg1: i32) -> (i32, i32) {
    %c0_i32 = arith.constant 0 : i32
    %c0_i32_0 = arith.constant 0 : i32
    %c0_i32_1 = arith.constant 0 : i32
    return %c0_i32, %c0_i32_0 : i32, i32
  }
  func.func @transform_17(%arg0: i32, %arg1: i32) -> (i32, i32) {
    %c0_i32 = arith.constant 0 : i32
    %c0_i32_0 = arith.constant 0 : i32
    %c0_i32_1 = arith.constant 0 : i32
    return %c0_i32, %c0_i32_0 : i32, i32
  }
  func.func @transform_18(%arg0: i32, %arg1: i32) -> (i32, i32, i32) {
    %c0_i32 = arith.constant 0 : i32
    %c0_i32_0 = arith.constant 0 : i32
    return %arg0, %arg1, %c0_i32 : i32, i32, i32
  }
  func.func @transform_19(%arg0: i32, %arg1: i32) -> (i32, i32, i32, i32) {
    %c0_i32 = arith.constant 0 : i32
    %c0_i32_0 = arith.constant 0 : i32
    %c0_i32_1 = arith.constant 0 : i32
    return %arg0, %c0_i32, %arg1, %c0_i32_0 : i32, i32, i32, i32
  }
}

</mosaic_0001>

<bundles_post_ra>
// kernel: tpu_custom_call.1
= control target key start
LH: loop header
LB: loop body
LE: loop exit
PB: predicated region body
PF: predicated region fallthrough
CT: control target
= control target key end

     0   :  { %s3711_s0 = inlined_call_operand.vmem [shape: f32[2,8,32], index: 0, kind: input, shape index: {}]   ;;  %s3712_s1 = inlined_call_operand.vmem [shape: f32[2,8,32], index: 1, kind: input, shape index: {}]   ;;  %s3713_s2 = inlined_call_operand.vmem [shape: bf16[32,64], index: 2, kind: input, shape index: {}]   ;;  %s3714_s3 = inlined_call_operand.hbm [shape: f32[1,64], index: 3, kind: input, shape index: {}]   ;;  %s3715_s4 = inlined_call_operand.vmem [shape: bf16[32,64], index: 4, kind: input, shape index: {}]   ;;  %s3716_s5 = inlined_call_operand.hbm [shape: f32[1,64], index: 5, kind: input, shape index: {}]   ;;  %s3717_s6 = inlined_call_operand.vmem [shape: bf16[32,64], index: 6, kind: input, shape index: {}]   ;;  %s3718_s7 = inlined_call_operand.hbm [shape: f32[1,64], index: 7, kind: input, shape index: {}]   ;;  %s3719_s8 = inlined_call_operand.vmem [shape: bf16[64,32], index: 8, kind: input, shape index: {}]   ;;  %s3720_s9 = inlined_call_operand.hbm [shape: f32[1,32], index: 9, kind: input, shape index: {}]   ;;  %s3721_s10 = inlined_call_operand.vmem [shape: f32[1,32], index: 10, kind: input, shape index: {}]   ;;  %s3722_s11 = inlined_call_operand.vmem [shape: f32[1,32], index: 11, kind: input, shape index: {}]   ;;  %s3723_s12 = inlined_call_operand.vmem [shape: bf16[32,64], index: 12, kind: input, shape index: {}]   ;;  %s3724_s13 = inlined_call_operand.vmem [shape: f32[1,64], index: 13, kind: input, shape index: {}]   ;;  %s3725_s14 = inlined_call_operand.vmem [shape: bf16[64,32], index: 14, kind: input, shape index: {}]   ;;  %s3726_s15 = inlined_call_operand.vmem [shape: f32[1,32], index: 15, kind: input, shape index: {}]   ;;  %s3727_s16 = inlined_call_operand.vmem [shape: f32[1,32], index: 16, kind: input, shape index: {}]   ;;  %s3728_s17 = inlined_call_operand.vmem [shape: f32[1,32], index: 17, kind: input, shape index: {}]   ;;  %s3729_s18 = inlined_call_operand.hbm [shape: f32[2,8,32], index: 18, kind: output, shape index: {0}]   ;;  %s3730_s19 = inlined_call_operand.hbm [shape: f32[2,4,8,8], index: 19, kind: output, shape index: {1}]  }
   0x1   :  { %3743 = sst [smem:[#allocation27_spill]] %s3711_s0 }
   0x2   :  { %3744 = sst [smem:[#allocation28_spill]] %s3712_s1 }
   0x3   :  { %3745 = sst [smem:[#allocation29_spill]] %s3713_s2 }
   0x4   :  { %3746 = sst [smem:[#allocation30_spill]] %s3714_s3 }
   0x5   :  { %3747 = sst [smem:[#allocation31_spill]] %s3716_s5 }
   0x6   :  { %3748 = sst [smem:[#allocation32_spill]] %s3718_s7 }
   0x7   :  { %3749 = sst [smem:[#allocation33_spill]] %s3720_s9 }
   0x8   :  { %3750 = sst [smem:[#allocation34_spill]] %s3729_s18 }
   0x9   :  { %25 = vsyncpa [#allocation5], 0 }
   0xa   :  { %26 = vsyncpa [#allocation8], 0 }
   0xb   :  { %27 = vsyncpa [#allocation11], 0 }
   0xc   :  { %28 = vsyncpa [#allocation6], 0 }
   0xd   :  { %30 = vsyncpa [#allocation6 + $0x1], 0 }
   0xe   :  { %31 = vsyncpa [#allocation14], 0 }
   0xf   :  { %33 = vsyncpa [#allocation14 + $0x1], 0  ;;  %s3225_s0 = smov 0   ;;  %s3227_s30 = smov 0  }
  0x10   :  { %s3229_s20 = smov 0   ;;  %s3231_s21 = smov 0  }
  0x11   :  { %s3233_s1 = smov 0   ;;  %s3235_s22 = smov 0  }
  0x12 LB: > { %3751 = sst [smem:[#allocation20_spill]] %s3084_s0  ;;  %s2521_s2 = sadd.s32 4294967295, %s3104_s22   ;;  %s3104_s22 = sphi %s3235_s22, %s39_s22   ;;  %s3100_s1 = sphi %s3233_s1, %s3780_s1   ;;  %s3096_s21 = sphi %s3231_s21, %s3779_s21   ;;  %s3092_s20 = sphi %s3229_s20, %s3778_s20   ;;  %s3088_s30 = sphi %s3227_s30, %s3782_s30   ;;  %s3084_s0 = sphi %s3225_s0, %s3781_s0  }
  0x13   : > { %3752 = sst [smem:[#allocation21_spill]] %s3092_s20  ;;  %s2522_s23 = sadd.s32 4294967294, %s3104_s22  }
  0x14   : > { %3753 = sst [smem:[#allocation22_spill]] %s3100_s1  ;;  %s51_s24 = sadd.s32 1, %s3100_s1 }
  0x15   : > { %3754 = sst [smem:[#allocation23_spill]] %s3104_s22  ;;  %s450_s25 = sadd.s32 1, %s3092_s20 }
  0x16   : > { %p53_p0 = scmp.ge.s32.totalorder %s51_s24, 2  ;;  %p460_p1 = scmp.ne.s32.totalorder %s3092_s20, %s3088_s30 }
  0x17   : > { %p461_p2 = scmp.eq.s32.totalorder %s2521_s2, 1  ;;  %p466_p3 = scmp.ne.s32.totalorder %s3088_s30, %s3084_s0 }
  0x18   : > { %s3784_s24 = smov (%p53_p0, %s51_s24), 0  ;;  %p467_p5 = scmp.eq.s32.totalorder %s2522_s23, 1 }
  0x19   : > { %3755 = sst [smem:[#allocation24_spill]] %s3784_s24  ;;  %p3265_p4 = por %p461_p2, %p460_p1 }
  0x1a   : > { %s445_s26 = ssub.s32 %s3100_s1, %s3784_s24  ;;  %p2523_p6 = scmp.ge.s32.totalorder %s3104_s22, 1 }
  0x1b   : > { %s3756_s3 = scalar_select %p3265_p4, 1, 0 }
  0x1c   : > { %p448_p7 = scmp.eq.s32.totalorder %s445_s26, 0  ;;  %p3272_p8 = por %p467_p5, %p466_p3 }
  0x1d   : > { %p502_p9 = scmp.lt.s32.totalorder %s3104_s22, 3  ;;  %p3284_p11 = scmp.eq.s32.totalorder %s2521_s2, 0 }
  0x1e   : > { %s3757_s27 = scalar_select %p3272_p8, 1, 0 }
  0x1f   : > { %s3278_s28 = scalar_select %p448_p7, %s3092_s20, %s450_s25  }
  0x20   : > { %3758 = sst [smem:[#allocation25_spill]] %s3757_s27  ;;  %p3280_p10 = pnand %p2523_p6, %p502_p9 }
  0x21   : > { %3759 = sst [smem:[#allocation26_spill]] %s3278_s28  ;;  %s3106_s23 = smov [#allocation7]  }
  0x22   : > { %s3761_s0 = scalar_select %p3284_p11, 1, 0 }
  0x23   : > { %p2750_p12 = pneg %p3280_p10  ;;  %s532_s26 = sshll.u32 %s3106_s23, 4  ;;  %s533_s26 = int_to_ptr.vmem [resolvable:$true] %s532_s26 }
  0x24   : > { %s3107_s25 = smov [#allocation4]   ;;  %s2893_s2 = scalar_lea.vmem %s533_s26, 16 }
  0x25   : > { %p3292_p13 = pnand %p3284_p11, %p2750_p12  ;;  %s518_s1 = sshll.u32 %s3107_s25, 4  ;;  %s519_s1 = int_to_ptr.vmem [resolvable:$true] %s518_s1 }
  0x26   : > { %p2894_p1 = scmp.ne.s32.totalorder %s533_s26, %s2893_s2  ;;  %s2900_s23 = scalar_lea.vmem %s533_s26, 32 }
  0x27   : > { %p2884_p0 = pneg %p3292_p13  ;;  %p2901_p5 = scmp.lt.s32.totalorder %s533_s26, %s533_s26 }
  0x28   : > { %p2902_p6 = scmp.lt.s32.totalorder %s2900_s23, %s2893_s2 }
  0x29   : > { %p2896_p2 = pnand %p2894_p1, %p2884_p0 }
  0x2a   : > { %p2903_p7 = por %p2902_p6, %p2901_p5 }
  0x2b   : > { %p2897_p3 = pneg %p2896_p2 }
  0x2d   : > { %p2904_p9 = pnand %p2903_p7, %p2897_p3 }
  0x2f   : > { %2907 = shalt.err (!%p2904_p9)
}
  0x30   : > { %s3763_s5 = sld [smem:[#allocation31_spill]]  ;;  %s2919_s25 = scalar_lea.vmem %s519_s1, 16 }
  0x31   : > { %p2920_p12 = scmp.ne.s32.totalorder %s519_s1, %s2919_s25  ;;  %s2926_s27 = scalar_lea.vmem %s519_s1, 32 }
  0x32   : > { %p2927_p2 = scmp.lt.s32.totalorder %s519_s1, %s519_s1  ;;  %p2928_p4 = scmp.lt.s32.totalorder %s2926_s27, %s2919_s25 }
  0x33   : > { %p2922_p8 = pnand %p2920_p12, %p2884_p0 }
  0x34   : > { %p2929_p11 = por %p2928_p4, %p2927_p2 }
  0x35   : > { %p2923_p1 = pneg %p2922_p8 }
  0x36   : > { %2756 = dma.hbm_to_vmem [thread:$0]  (!%p3292_p13), %s3763_s5, 16, %s533_s26, [#allocation8]  }
  0x37   : > { %p2930_p5 = pnand %p2929_p11, %p2923_p1 }
  0x39   : > { %2933 = shalt.err (!%p2930_p5)
}
  0x3a   : > { %s3764_s22 = sld [smem:[#allocation30_spill]]  ;;  %s3108_s20 = smov [#allocation9]  }
  0x3b   : > { %s546_s28 = sshll.u32 %s3108_s20, 4  ;;  %s3109_s26 = smov [#allocation10]   ;;  %s547_s28 = int_to_ptr.vmem [resolvable:$true] %s546_s28 }
  0x3c   : > { %s560_s5 = sshll.u32 %s3109_s26, 4  ;;  %s2945_s18 = scalar_lea.vmem %s547_s28, 16  ;;  %s561_s5 = int_to_ptr.vmem [resolvable:$true] %s560_s5 }
  0x3d   : > { %p2946_p8 = scmp.ne.s32.totalorder %s547_s28, %s2945_s18  ;;  %s2952_s27 = scalar_lea.vmem %s547_s28, 32 }
  0x3e   : > { %p2953_p11 = scmp.lt.s32.totalorder %s547_s28, %s547_s28  ;;  %p2954_p6 = scmp.lt.s32.totalorder %s2952_s27, %s2945_s18 }
  0x3f   : > { %p2948_p3 = pnand %p2946_p8, %p2884_p0 }
  0x40   : > { %2753 = dma.hbm_to_vmem [thread:$0]  (!%p3292_p13), %s3764_s22, 16, %s519_s1, [#allocation5]  }
  0x41   : > { %p2949_p4 = pneg %p2948_p3  ;;  %p2955_p7 = por %p2954_p6, %p2953_p11 }
  0x43   : > { %p2956_p9 = pnand %p2955_p7, %p2949_p4 }
  0x45   : > { %2959 = shalt.err (!%p2956_p9)
}
  0x46   : > { %s3765_s7 = sld [smem:[#allocation32_spill]]  ;;  %s2971_s25 = scalar_lea.vmem %s561_s5, 16 }
  0x47   : > { %p2972_p12 = scmp.ne.s32.totalorder %s561_s5, %s2971_s25  ;;  %s2978_s2 = scalar_lea.vmem %s561_s5, 32 }
  0x48   : > { %p2979_p5 = scmp.lt.s32.totalorder %s561_s5, %s561_s5  ;;  %p2980_p8 = scmp.lt.s32.totalorder %s2978_s2, %s2971_s25 }
  0x49   : > { %p2974_p1 = pnand %p2972_p12, %p2884_p0 }
  0x4a   : > { %p2981_p3 = por %p2980_p8, %p2979_p5 }
  0x4b   : > { %p2975_p2 = pneg %p2974_p1 }
  0x4c   : > { %2759 = dma.hbm_to_vmem [thread:$0]  (!%p3292_p13), %s3765_s7, 16, %s547_s28, [#allocation8]  }
  0x4d   : > { %p2982_p4 = pnand %p2981_p3, %p2975_p2 }
  0x4f   : > { %2985 = shalt.err (!%p2982_p4)
}
  0x50   : > { %s3766_s9 = sld [smem:[#allocation33_spill]]  ;;  %p3767_p11 = scmp.ne.s32.totalorder (!%p3280_p10), %s3761_s0, 0 }
  0x52   : > { %614 = sbr.rel (%p3280_p10) target bundleno = 2563 (0xa03), region = 92 }
  0x56   : > { %2762 = dma.hbm_to_vmem [thread:$0]  (!%p3292_p13), %s3766_s9, 16, %s561_s5, [#allocation11]  }
  0x57   : > { %3063 = dma.done.wait (%p3767_p11), [#allocation5], 16  }
  0x58   : > { %3065 = vsyncadd (%p3767_p11), [#allocation5], 4294967280 }
  0x59   : > { %3067 = dma.done.wait (%p3767_p11), [#allocation8], 32  }
  0x5a   : > { %3069 = vsyncadd (%p3767_p11), [#allocation8], 4294967264 }
  0x5b   : > { %3071 = dma.done.wait (%p3767_p11), [#allocation11], 16  }
  0x5c   : > { %3073 = vsyncadd (%p3767_p11), [#allocation11], 4294967280  ;;  %p693_p10 = scmp.lt.s32.totalorder %s3096_s21, 1  ;;  %v3110_v0 = vmov 0.0   ;;  %vm3111_vm0 = vmmov 0   ;;  %v2844_v1 = vld [vmem:[%s3715_s4 + $0x8] sm:$0xff]   ;;  %v852_v27 = vlaneseq }
  0x5d   : > { %2626 = vmatprep.subr.bf16.mxu1 %v3110_v0  ;;  %2642 = vmatprep.subr.bf16.mxu0 %v3110_v0  ;;  %s3768_s26 = sld [smem:[#allocation28_spill]]  ;;  %v2845_v2 = vld [vmem:[%s3715_s4] sm:$0xff]   ;;  %vm734_vm1 = vcmask 261120   ;;  %s3112_s7 = smov 80   ;;  %v2848_v23 = vld [vmem:[%s3717_s6 + $0x8] sm:$0xff]   ;;  %v3117_v47 = vmov 0  }
  0x5e   : > { %2630 = vmatprep.mubr.msk.bf16.mxu1 %vm3111_vm0, %v3110_v0  ;;  %s694_s5 = scalar_select %p693_p10, %s3096_s21, 1  ;;  %2646 = vmatprep.mubr.msk.bf16.mxu0 %vm3111_vm0, %v3110_v0  ;;  %v2538_v9 = vld [vmem:[#allocation7] ss:$0 sm:$0xff]  ;;  %v2546_v11 = vld [vmem:[#allocation4] ss:$0 sm:$0xff]  ;;  %v853_v31 = vshrl.u32 %v852_v27, 7 }
  0x5f   : > { %s3769_s18 = sld [smem:[#allocation27_spill]]  ;;  %2627 = vmatpush3.bf16.msra.mxu1 %v2844_v1  ;;  %s3113_s9 = smov 112   ;;  %v2849_v24 = vld [vmem:[%s3717_s6] sm:$0xff]   ;;  %v3115_v25 = vmov 1983009808   ;;  %vm1014_vm2 = vcmask 125952  }
  0x60   : > { %s2536_s24 = sshll.u32 %s694_s5, 3  ;;  %s3770_s5 = sld [smem:[#allocation29_spill]]  ;;  %2628 = vmatprep.subr.bf16.mxu1 %v3110_v0  ;;  %v850_v26 = vunpack.c.l.s4 %v3115_v25  ;;  %v3116_v28 = vmov 1934713408   ;;  %vm1442_vm3 = vcmask 130048   ;;  %vm1631_vm4 = vcmask 64512  }
  0x61   : > { %v867_v29 = vunpack.c.l.s4 %v3116_v28  ;;  %vm1687_vm5 = vcmask 1043456   ;;  %s3521_s1 = sand.u32 1, %s3088_s30   ;;  %s3118_s20 = smov 32   ;;  %vm2019_vm6 = vcmask 392192   ;;  %vm2061_vm7 = vcmask 523264  }
  0x62   : > { %v851_v30 = vunpack.c.0.s8 %v850_v26  ;;  %s2535_s22 = sshll.u32 %s3521_s1, 5  ;;  %s3119_s28 = smov 16  }
  0x63   : > { %s703_s27 = scalar_lea.vmem %s3768_s26, %s2536_s24  ;;  %2629 = vmatpush3.bf16.msra.mxu1 %v2845_v2  ;;  %v868_v32 = vunpack.c.0.s8 %v867_v29  ;;  %s3526_s25 = scalar_lea.vmem [#allocation13], %s2535_s22 }
  0x64   : > { %v709_v4 = vld [vmem:[%s703_s27] sm:$0xff]  ;;  %2634 = vmatprep.subr.bf16.mxu1 %v3110_v0  ;;  %v3401_v33 = vsub.s32 %v851_v30, %v853_v31  ;;  %s3120_s26 = smov 48   ;;  %p3771_p0 = scmp.ne.s32.totalorder %s3756_s3, 0 }
  0x65   : > { %s699_s23 = scalar_lea.vmem %s3769_s18, %s2536_s24  ;;  %v710_v7 = vpack.c.bf16 %v709_v4, %v709_v4  ;;  %s3114_s24 = smov 96   ;;  %v3404_v37 = vsub.s32 %v868_v32, %v853_v31 }
  0x66   : > { %v2846_v3 = vld [vmem:[%s3770_s5 + $0x8] sm:$0xff]   ;;  %v2847_v5 = vld [vmem:[%s3770_s5] sm:$0xff]   ;;  %s3121_s22 = smov [#allocation13]  }
  0x67   : > { %2643 = vmatpush3.bf16.msra.mxu0 %v2846_v3  ;;  %v3371_v6 = vld [vmem:[%s699_s23] sm:$0xff]  ;;  %2631 = vmatmul.mubr.msk.bf16.vlgmr.msra.gmra.mxu1 %vm734_vm1, %v710_v7  ;;  %s2990_s2 = sshll.u32 %s3121_s22, 4  ;;  %s2991_s2 = int_to_ptr.vmem [resolvable:$false] %s2990_s2 }
  0x68   : > { %2644 = vmatprep.subr.bf16.mxu0 %v3110_v0  ;;  %v1197_v8 = vpack.c.bf16 %v3371_v6, %v3371_v6  ;;  %2638 = vmatprep.mubr.msk.bf16.mxu1 %vm3111_vm0, %v3110_v0 }
  0x69   : > { %2635 = vmatpush3.bf16.msra.mxu1 %v2848_v23 }
  0x6a   : > { %2636 = vmatprep.subr.bf16.mxu1 %v3110_v0 }
  0x6b   : > { %2645 = vmatpush3.bf16.msra.mxu0 %v2847_v5 }
  0x6c   : > { %2656 = vmatprep.subr.bf16.mxu0 %v3110_v0 }
  0x6d   : > { %2637 = vmatpush3.bf16.msra.mxu1 %v2849_v24 }
  0x6e   : > { %2647 = vmatmul.mubr.msk.bf16.vlgmr.msra.gmra.mxu0 %vm734_vm1, %v1197_v8  ;;  %2650 = vmatprep.subr.bf16.mxu1 %v3110_v0 }
  0x6f   : > { %2658 = vmatprep.mubr.msk.bf16.mxu0 %vm3111_vm0, %v3110_v0 }
  0x70   : > { %2639 = vmatmul.mubr.msk.bf16.vlgmr.msra.gmra.mxu1 %vm734_vm1, %v710_v7 }
  0x71   : > { %2652 = vmatprep.mubr.msk.bf16.mxu1 %vm3111_vm0, %v3110_v0 }
 0x127   : > { %v772_v10 = vpop.f32.mrf.mxu1 }
 0x128   : > { %v773_v12 = vadd.f32 %v2538_v9, %v772_v10 }
 0x129   : > { %v2632_v13 = vpop.f32.mrf.mxu1 }
 0x12a   : > { %v841_v15 = vpack.c.bf16 %v773_v12, %v773_v12 }
 0x12b   : > { %v775_v17 = vpop.f32.mrf.mxu1 }
 0x12c   : > { %847 = vrot.lane.b32.xlu1 %v841_v15, %s3112_s7  ;;  %843 = vrot.lane.b32.xlu0 %v841_v15, %s3113_s9  ;;  %v855_v46 = vrot.slane %v841_v15, %v3401_v33 }
 0x12d   : > { %v2633_v20 = vpop.f32.mrf.mxu1 }
 0x12e   : > { %v1259_v14 = vpop.f32.mrf.mxu0 }
 0x12f   : > { %v1260_v16 = vadd.f32 %v2546_v11, %v1259_v14 }
 0x130   : > { %v2648_v18 = vpop.f32.mrf.mxu0  ;;  %845 = vrot.lane.b32.xlu0 %v841_v15, %s3114_s24 }
 0x131   : > { %v1265_v19 = vpack.c.bf16 %v1260_v16, %v1260_v16 }
 0x132   : > { %v1262_v21 = vpop.f32.mrf.mxu0 }
 0x133   : > { %1267 = vrot.lane.b32.xlu1 %v1265_v19, %s3113_s9  ;;  %v1279_v54 = vrot.slane %v1265_v19, %v3401_v33 }
 0x134   : > { %v2649_v22 = vpop.f32.mrf.mxu0  ;;  %1269 = vrot.lane.b32.xlu0 %v1265_v19, %s3114_s24 }
 0x137   : > { %1271 = vrot.lane.b32.xlu1 %v1265_v19, %s3112_s7 }
 0x19e   : > { %v848_v34 = vpop.permute.xlu1 %847  ;;  %v844_v35 = vpop.permute.xlu0 %843 }
 0x19f   : > { %v897_v36 = vrot.slane %v848_v34, %v3401_v33  ;;  %v889_v38 = vrot.slane %v844_v35, %v3401_v33 }
 0x1a1   : > { %v898_v39 = vcombine.low %v889_v38, %v897_v36  ;;  %v899_v40 = vcombine.high %v889_v38, %v897_v36 }
 0x1a2   : > { %v846_v42 = vpop.permute.xlu0 %845 }
 0x1a3   : > { %v906_v43 = vrot.slane %v898_v39, %v3404_v37  ;;  %v913_v44 = vrot.slane %v899_v40, %v3404_v37  ;;  %v863_v45 = vrot.slane %v846_v42, %v3401_v33 }
 0x1a5   : > { %v1268_v41 = vpop.permute.xlu1 %1267  ;;  %v914_v48 = vcombine.high %v906_v43, %v3117_v47  ;;  %v915_v49 = vcombine.high %v913_v44, %v3117_v47  ;;  %v864_v51 = vcombine.low %v855_v46, %v863_v45  ;;  %v865_v52 = vcombine.high %v855_v46, %v863_v45 }
 0x1a6   : > { %v1313_v50 = vrot.slane %v1268_v41, %v3401_v33  ;;  %v1270_v55 = vpop.permute.xlu0 %1269  ;;  %v921_v56 = vshrl.u32 %v906_v43, 16  ;;  %v937_v57 = vshrl.u32 %v913_v44, 16 }
 0x1a7   : > { %v1287_v59 = vrot.slane %v1270_v55, %v3401_v33  ;;  %v929_v60 = vshrl.u32 %v914_v48, 16  ;;  %v945_v61 = vshrl.u32 %v915_v49, 16  ;;  %v872_v62 = vrot.slane %v864_v51, %v3404_v37 }
 0x1a8   : > { %v879_v63 = vrot.slane %v865_v52, %v3404_v37 }
 0x1a9   : > { %v1272_v53 = vpop.permute.xlu1 %1271  ;;  %v1288_v3 = vcombine.low %v1279_v54, %v1287_v59  ;;  %v1289_v4 = vcombine.high %v1279_v54, %v1287_v59  ;;  %v880_v5 = vcombine.high %v872_v62, %v3117_v47  ;;  %v918_v8 = vpack.i.b16 %v906_v43, %v872_v62 }
 0x1aa   : > { %v1321_v58 = vrot.slane %v1272_v53, %v3401_v33  ;;  %v881_v7 = vcombine.high %v879_v63, %v3117_v47  ;;  %v920_v9 = vshrl.u32 %v872_v62, 16  ;;  %v934_v10 = vpack.i.b16 %v913_v44, %v879_v63 }
 0x1ab   : > { %v936_v11 = vshrl.u32 %v879_v63, 16  ;;  %v926_v15 = vpack.i.b16 %v914_v48, %v880_v5  ;;  %v928_v16 = vshrl.u32 %v880_v5, 16  ;;  %v1296_v30 = vrot.slane %v1288_v3, %v3404_v37 }
 0x1ac   : > { %v1322_v1 = vcombine.low %v1313_v50, %v1321_v58  ;;  %v1323_v2 = vcombine.high %v1313_v50, %v1321_v58  ;;  %v922_v14 = vpack.i.b16 %v921_v56, %v920_v9  ;;  %v942_v17 = vpack.i.b16 %v915_v49, %v881_v7 }
 0x1ad   : > { %v938_v18 = vpack.i.b16 %v937_v57, %v936_v11  ;;  %v944_v19 = vshrl.u32 %v881_v7, 16  ;;  %v948_v20 = vcombine.low %v918_v8, %v934_v10  ;;  %v930_v22 = vpack.i.b16 %v929_v60, %v928_v16 }
 0x1ae   : > { %v1330_v12 = vrot.slane %v1322_v1, %v3404_v37  ;;  %v1337_v13 = vrot.slane %v1323_v2, %v3404_v37  ;;  %v956_v23 = vcombine.low %v926_v15, %v942_v17  ;;  %v1303_v35 = vrot.slane %v1289_v4, %v3404_v37 }
 0x1af   : > { %v946_v25 = vpack.i.b16 %v945_v61, %v944_v19  ;;  %v973_v26 = vcombine.low %v922_v14, %v938_v18  ;;  %v955_v27 = vrot.slane %v948_v20, %v3401_v33  ;;  %v1304_v39 = vcombine.high %v1296_v30, %v3117_v47 }
 0x1b0   : > { %v1338_v21 = vcombine.high %v1330_v12, %v3117_v47  ;;  %v1339_v24 = vcombine.high %v1337_v13, %v3117_v47  ;;  %v963_v28 = vrot.slane %v956_v23, %v3401_v33  ;;  %v1345_v29 = vshrl.u32 %v1330_v12, 16 }
 0x1b1   : > { %v981_v31 = vcombine.low %v930_v22, %v946_v25  ;;  %v1361_v34 = vshrl.u32 %v1337_v13, 16  ;;  %v1344_v40 = vshrl.u32 %v1296_v30, 16  ;;  %v980_v41 = vrot.slane %v973_v26, %v3401_v33 }
 0x1b2   : > { %v1353_v32 = vshrl.u32 %v1338_v21, 16  ;;  %v964_v36 = vcombine.low %v955_v27, %v963_v28  ;;  %v1369_v38 = vshrl.u32 %v1339_v24, 16  ;;  %v1305_v43 = vcombine.high %v1303_v35, %v3117_v47 }
 0x1b3   : > { %v988_v42 = vrot.slane %v981_v31, %v3401_v33  ;;  %v1360_v44 = vshrl.u32 %v1303_v35, 16  ;;  %v1346_v46 = vpack.i.b16 %v1345_v29, %v1344_v40  ;;  %v1350_v48 = vpack.i.b16 %v1338_v21, %v1304_v39 }
 0x1b4   : > { %v971_v45 = vrot.slane %v964_v36, %v3404_v37  ;;  %v1352_v49 = vshrl.u32 %v1304_v39, 16  ;;  %v1366_v52 = vpack.i.b16 %v1339_v24, %v1305_v43  ;;  %v1368_v53 = vshrl.u32 %v1305_v43, 16  ;;  %v835_v39 = vpop.f32.mrf.mxu1 }
 0x1b5   : > { %v989_v50 = vcombine.low %v980_v41, %v988_v42  ;;  %v1362_v51 = vpack.i.b16 %v1361_v34, %v1360_v44  ;;  %v1342_v54 = vpack.i.b16 %v1330_v12, %v1296_v30  ;;  %v1358_v56 = vpack.i.b16 %v1337_v13, %v1303_v35 }
 0x1b6   : > { %v1354_v55 = vpack.i.b16 %v1353_v32, %v1352_v49  ;;  %v972_v57 = vcombine.high %v971_v45, %v3117_v47  ;;  %v1370_v59 = vpack.i.b16 %v1369_v38, %v1368_v53  ;;  %v1002_v60 = vshrl.u32 %v971_v45, 16  ;;  %v2640_v40 = vpop.f32.mrf.mxu1 }
 0x1b7   : > { %v996_v58 = vrot.slane %v989_v50, %v3404_v37  ;;  %v1380_v61 = vcombine.low %v1350_v48, %v1366_v52  ;;  %v1397_v2 = vcombine.low %v1346_v46, %v1362_v51  ;;  %v1372_v3 = vcombine.low %v1342_v54, %v1358_v56 }
 0x1b8   : > { %v1405_v4 = vcombine.low %v1354_v55, %v1370_v59  ;;  %v1010_v8 = vshrl.u32 %v972_v57, 16  ;;  %v838_v41 = vpop.f32.mrf.mxu1 }
 0x1b9   : > { %v997_v62 = vcombine.high %v996_v58, %v3117_v47  ;;  %v1000_v63 = vpack.i.b16 %v996_v58, %v971_v45  ;;  %v1003_v1 = vshrl.u32 %v996_v58, 16  ;;  %v1387_v12 = vrot.slane %v1380_v61, %v3401_v33 }
 0x1ba   : > { %v1412_v10 = vrot.slane %v1405_v4, %v3401_v33  ;;  %v1404_v13 = vrot.slane %v1397_v2, %v3401_v33  ;;  %v1379_v14 = vrot.slane %v1372_v3, %v3401_v33  ;;  %v2641_v42 = vpop.f32.mrf.mxu1 }
 0x1bb   : > { %v1004_v5 = vpack.i.b16 %v1003_v1, %v1002_v60  ;;  %v1008_v7 = vpack.i.b16 %v997_v62, %v972_v57  ;;  %v1011_v9 = vshrl.u32 %v997_v62, 16  ;;  %1015 = vst.msk [vmem:[#allocation2] sm:$0xf] %vm1014_vm2, %v1000_v63  ;;  %v2542_v1 = vld [vmem:[#allocation9] ss:$0 sm:$0xff] }
 0x1bc   : > { %v1413_v15 = vcombine.low %v1404_v13, %v1412_v10  ;;  %v1388_v16 = vcombine.low %v1379_v14, %v1387_v12 }
 0x1bd   : > { %v1012_v11 = vpack.i.b16 %v1011_v9, %v1010_v8  ;;  %1016 = vst.msk [vmem:[#allocation2 + $0x4] sm:$0xf] %vm1014_vm2, %v1004_v5  ;;  %1017 = vst.msk [vmem:[#allocation2 + $0x8] sm:$0xf] %vm1014_vm2, %v1008_v7  ;;  %v836_v7 = vadd.f32 %v2542_v1, %v835_v39 }
 0x1be   : > { %v1420_v19 = vrot.slane %v1413_v15, %v3404_v37  ;;  %v1395_v22 = vrot.slane %v1388_v16, %v3404_v37 }
 0x1bf   : > { %1018 = vst.msk [vmem:[#allocation2 + $0xc] sm:$0xf] %vm1014_vm2, %v1012_v11  ;;  %v1019_v8 = vpack.c.bf16 %v836_v7, %v836_v7 }
 0x1c0   : > { %v1426_v23 = vshrl.u32 %v1420_v19, 16  ;;  %v1424_v25 = vpack.i.b16 %v1420_v19, %v1395_v22  ;;  %v1425_v26 = vshrl.u32 %v1395_v22, 16  ;;  %v1421_v30 = vcombine.high %v1420_v19, %v3117_v47 }
 0x1c1   : > { %v1396_v32 = vcombine.high %v1395_v22, %v3117_v47 }
 0x1c2   : > { %v1434_v17 = vld [vmem:[#allocation2] sm:$0xf]  ;;  %v1427_v29 = vpack.i.b16 %v1426_v23, %v1425_v26  ;;  %v1432_v34 = vshrl.u32 %v1421_v30, 16 }
 0x1c3   : > { %v1447_v18 = vsel %vm1442_vm3, %v1434_v17, 0  ;;  %v1430_v35 = vpack.i.b16 %v1421_v30, %v1396_v32  ;;  %v1431_v36 = vshrl.u32 %v1396_v32, 16 }
 0x1c4   : > { %2651 = vmatpush3.bf16.xpose.msra.mxu1 %v1447_v18  ;;  %v1435_v20 = vld [vmem:[#allocation2 + $0x4] sm:$0xf]  ;;  %v1436_v24 = vld [vmem:[#allocation2 + $0x8] sm:$0xf] }
 0x1c5   : > { %v1493_v21 = vsel %vm1442_vm3, %v1435_v20, 0  ;;  %2662 = vmatprep.subr.bf16.mxu1 %v3110_v0  ;;  %v1539_v28 = vsel %vm1442_vm3, %v1436_v24, 0  ;;  %v1433_v38 = vpack.i.b16 %v1432_v34, %v1431_v36 }
 0x1c6   : > { %2657 = vmatpush3.bf16.xpose.msra.mxu0 %v1493_v21  ;;  %v1437_v27 = vld [vmem:[#allocation2 + $0xc] sm:$0xf] }
 0x1c7   : > { %2668 = vmatprep.subr.bf16.mxu0 %v3110_v0  ;;  %v1585_v31 = vsel %vm1442_vm3, %v1437_v27, 0 }
 0x1cb   : > { %2653 = vmatmul.mubr.msk.bf16.vlgmr.msra.gmra.mxu1 %vm1442_vm3, %v1424_v25 }
 0x1cc   : > { %2663 = vmatpush3.bf16.xpose.msra.mxu1 %v1539_v28  ;;  %2664 = vmatprep.mubr.msk.bf16.mxu1 %vm3111_vm0, %v3110_v0 }
 0x1cd   : > { %2659 = vmatmul.mubr.msk.bf16.vlgmr.msra.gmra.mxu0 %vm1442_vm3, %v1427_v29  ;;  %2674 = vmatprep.subr.bf16.mxu1 %v3110_v0 }
 0x1ce   : > { %2669 = vmatpush3.bf16.xpose.msra.mxu0 %v1585_v31  ;;  %2670 = vmatprep.mubr.msk.bf16.mxu0 %vm3111_vm0, %v3110_v0  ;;  %v1033_v31 = vrot.slane %v1019_v8, %v3401_v33 }
 0x1cf   : > { %2680 = vmatprep.subr.bf16.mxu0 %v3110_v0 }
 0x1d3   : > { %2665 = vmatmul.mubr.msk.bf16.vlgmr.msra.gmra.mxu1 %vm1442_vm3, %v1430_v35 }
 0x1d4   : > { %2676 = vmatprep.mubr.msk.bf16.mxu1 %vm3111_vm0, %v3110_v0 }
 0x1d5   : > { %2671 = vmatmul.mubr.msk.bf16.vlgmr.msra.gmra.mxu0 %vm1442_vm3, %v1433_v38 }
 0x1d6   : > { %2682 = vmatprep.mubr.msk.bf16.mxu0 %vm3111_vm0, %v3110_v0 }
 0x28b   : > { %v1483_v43 = vpop.f32.mrf.mxu1 }
 0x28c   : > { %v1627_v44 = vmul.f32 0.25, %v1483_v43 }
 0x28d   : > { %v2654_v45 = vpop.f32.mrf.mxu1  ;;  %v1529_v46 = vpop.f32.mrf.mxu0 }
 0x28e   : > { %v1628_v48 = vmul.f32 0.25, %v1529_v46  ;;  %v1632_v49 = vsel %vm1631_vm4, %v1627_v44, -inf }
 0x28f   : > { %v2660_v50 = vpop.f32.mrf.mxu0  ;;  %1633 = vmax.xlane.f32.xlu0 %v1632_v49  ;;  %v1486_v51 = vpop.f32.mrf.mxu1 }
 0x290   : > { %v1635_v52 = vsel %vm1631_vm4, %v1628_v48, -inf }
 0x291   : > { %1636 = vmax.xlane.f32.xlu1 %v1635_v52  ;;  %v2655_v53 = vpop.f32.mrf.mxu1  ;;  %v1532_v54 = vpop.f32.mrf.mxu0 }
 0x293   : > { %v2661_v55 = vpop.f32.mrf.mxu0  ;;  %v1575_v56 = vpop.f32.mrf.mxu1 }
 0x294   : > { %v1629_v57 = vmul.f32 0.25, %v1575_v56 }
 0x295   : > { %v2666_v58 = vpop.f32.mrf.mxu1  ;;  %v1621_v59 = vpop.f32.mrf.mxu0 }
 0x296   : > { %v1630_v60 = vmul.f32 0.25, %v1621_v59  ;;  %v1638_v61 = vsel %vm1631_vm4, %v1629_v57, -inf }
 0x297   : > { %v2672_v62 = vpop.f32.mrf.mxu0  ;;  %1639 = vmax.xlane.f32.xlu0 %v1638_v61  ;;  %v1578_v63 = vpop.f32.mrf.mxu1 }
 0x298   : > { %v1641_v4 = vsel %vm1631_vm4, %v1630_v60, -inf }
 0x299   : > { %v2667_v2 = vpop.f32.mrf.mxu1  ;;  %v1624_v3 = vpop.f32.mrf.mxu0 }
 0x29b   : > { %v2673_v5 = vpop.f32.mrf.mxu0  ;;  %1642 = vmax.xlane.f32.xlu0 %v1641_v4 }
 0x2a2   : > { %1021 = vrot.lane.b32.xlu1 %v1019_v8, %s3113_s9  ;;  %s2587_s9 = sshll.u32 %s3096_s21, 9 }
 0x2a6   : > { %1025 = vrot.lane.b32.xlu1 %v1019_v8, %s3112_s7  ;;  %s2360_s7 = sshll.u32 %s3526_s25, 4  ;;  %s3634_s7 = int_to_ptr.vmem [resolvable:$true] %s2360_s7 }
 0x2a7   : > { %s2986_s27 = scalar_lea.vmem %s3634_s7, 512  ;;  %p2993_p9 = scmp.lt.s32.totalorder %s3634_s7, %s2991_s2 }
 0x2a8   : > { %p2987_p13 = scmp.ne.s32.totalorder %s3634_s7, %s2986_s27 }
 0x2aa   : > { %p2988_p6 = pnand %p2987_p13, %p3771_p0 }
 0x2ac   : > { %p2989_p7 = pneg %p2988_p6 }
 0x2b1   : > { %1023 = vrot.lane.b32.xlu0 %v1019_v8, %s3114_s24 }
 0x318   : > { %v1634_v9 = vpop.xlane.xlu0 %1633 }
 0x319   : > { %v1644_v10 = vsub.f32 %v1627_v44, %v1634_v9 }
 0x31a   : > { %v1637_v11 = vpop.xlane.xlu1 %1636 }
 0x31b   : > { %v1648_v12 = vmul.f32 1.442695, %v1644_v10  ;;  %v1645_v13 = vsub.f32 %v1628_v48, %v1637_v11 }
 0x31d   : > { %2860 = vpow2.f32 %v1648_v12  ;;  %v1650_v14 = vmul.f32 1.442695, %v1645_v13 }
 0x31e   : > { %v1022_v15 = vpop.permute.xlu1 %1021 }
 0x31f   : > { %2862 = vpow2.f32 %v1650_v14  ;;  %v1067_v19 = vrot.slane %v1022_v15, %v3401_v33 }
 0x320   : > { %v1640_v16 = vpop.xlane.xlu0 %1639 }
 0x321   : > { %v1646_v17 = vsub.f32 %v1629_v57, %v1640_v16 }
 0x322   : > { %v1026_v18 = vpop.permute.xlu1 %1025 }
 0x323   : > { %v1652_v20 = vmul.f32 1.442695, %v1646_v17  ;;  %v1075_v21 = vrot.slane %v1026_v18, %v3401_v33 }
 0x324   : > { %v1643_v22 = vpop.xlane.xlu0 %1642 }
 0x325   : > { %2864 = vpow2.f32 %v1652_v20  ;;  %v1076_v23 = vcombine.low %v1067_v19, %v1075_v21  ;;  %v1077_v24 = vcombine.high %v1067_v19, %v1075_v21  ;;  %v1647_v25 = vsub.f32 %v1630_v60, %v1643_v22 }
 0x327   : > { %v1654_v26 = vmul.f32 1.442695, %v1647_v25  ;;  %v1084_v28 = vrot.slane %v1076_v23, %v3404_v37  ;;  %v1091_v29 = vrot.slane %v1077_v24, %v3404_v37 }
 0x328   : > { %v1024_v27 = vpop.permute.xlu0 %1023 }
 0x329   : > { %2866 = vpow2.f32 %v1654_v26  ;;  %v1041_v32 = vrot.slane %v1024_v27, %v3401_v33  ;;  %v1092_v39 = vcombine.high %v1084_v28, %v3117_v47  ;;  %v1093_v40 = vcombine.high %v1091_v29, %v3117_v47 }
 0x32a   : > { %v3480_v30 = vpop.eup %2860  ;;  %v1099_v44 = vshrl.u32 %v1084_v28, 16  ;;  %v1115_v45 = vshrl.u32 %v1091_v29, 16 }
 0x32b   : > { %v1656_v34 = vsel %vm1631_vm4, %v3480_v30, 0.0  ;;  %v1042_v36 = vcombine.low %v1033_v31, %v1041_v32  ;;  %v1043_v38 = vcombine.high %v1033_v31, %v1041_v32  ;;  %v1107_v51 = vshrl.u32 %v1092_v39, 16 }
 0x32c   : > { %v3486_v35 = vpop.eup %2862  ;;  %1657 = vadd.xlane.f32.xlu1 %v1656_v34  ;;  %v1123_v52 = vshrl.u32 %v1093_v40, 16 }
 0x32d   : > { %v1659_v41 = vsel %vm1631_vm4, %v3486_v35, 0.0  ;;  %v1050_v42 = vrot.slane %v1042_v36, %v3404_v37  ;;  %v1057_v43 = vrot.slane %v1043_v38, %v3404_v37 }
 0x32e   : > { %1660 = vadd.xlane.f32.xlu0 %v1659_v41 }
 0x32f   : > { %v1058_v46 = vcombine.high %v1050_v42, %v3117_v47  ;;  %v1059_v48 = vcombine.high %v1057_v43, %v3117_v47  ;;  %v1096_v49 = vpack.i.b16 %v1084_v28, %v1050_v42  ;;  %v1098_v50 = vshrl.u32 %v1050_v42, 16 }
 0x330   : > { %v1112_v53 = vpack.i.b16 %v1091_v29, %v1057_v43  ;;  %v1114_v54 = vshrl.u32 %v1057_v43, 16 }
 0x331   : > { %v1100_v56 = vpack.i.b16 %v1099_v44, %v1098_v50  ;;  %v1104_v57 = vpack.i.b16 %v1092_v39, %v1058_v46  ;;  %v1106_v58 = vshrl.u32 %v1058_v46, 16  ;;  %v1120_v59 = vpack.i.b16 %v1093_v40, %v1059_v48 }
 0x332   : > { %v3496_v55 = vpop.eup %2864  ;;  %v1116_v60 = vpack.i.b16 %v1115_v45, %v1114_v54  ;;  %v1122_v61 = vshrl.u32 %v1059_v48, 16  ;;  %v1126_v62 = vcombine.low %v1096_v49, %v1112_v53  ;;  %v2850_v53 = vld [vmem:[%s3719_s8 + $0x18] sm:$0xff]   ;;  %v2851_v54 = vld [vmem:[%s3719_s8 + $0x10] sm:$0xff]  }
 0x333   : > { %v1662_v63 = vsel %vm1631_vm4, %v3496_v55, 0.0  ;;  %v1108_v1 = vpack.i.b16 %v1107_v51, %v1106_v58  ;;  %v1134_v2 = vcombine.low %v1104_v57, %v1120_v59 }
 0x334   : > { %1663 = vadd.xlane.f32.xlu0 %v1662_v63  ;;  %v1124_v3 = vpack.i.b16 %v1123_v52, %v1122_v61  ;;  %v1151_v4 = vcombine.low %v1100_v56, %v1116_v60  ;;  %v1133_v5 = vrot.slane %v1126_v62, %v3401_v33 }
 0x335   : > { %v1141_v7 = vrot.slane %v1134_v2, %v3401_v33 }
 0x336   : > { %v3502_v8 = vpop.eup %2866  ;;  %v1159_v9 = vcombine.low %v1108_v1, %v1124_v3  ;;  %v1158_v12 = vrot.slane %v1151_v4, %v3401_v33 }
 0x337   : > { %v1142_v10 = vcombine.low %v1133_v5, %v1141_v7  ;;  %v1665_v11 = vsel %vm1631_vm4, %v3502_v8, 0.0 }
 0x338   : > { %v1166_v13 = vrot.slane %v1159_v9, %v3401_v33  ;;  %1666 = vadd.xlane.f32.xlu1 %v1665_v11 }
 0x339   : > { %v1149_v14 = vrot.slane %v1142_v10, %v3404_v37 }
 0x33a   : > { %v1167_v15 = vcombine.low %v1158_v12, %v1166_v13 }
 0x33b   : > { %v1150_v16 = vcombine.high %v1149_v14, %v3117_v47  ;;  %v1180_v20 = vshrl.u32 %v1149_v14, 16 }
 0x33c   : > { %v1174_v17 = vrot.slane %v1167_v15, %v3404_v37 }
 0x33d   : > { %v1188_v24 = vshrl.u32 %v1150_v16, 16 }
 0x33e   : > { %v1175_v18 = vcombine.high %v1174_v17, %v3117_v47  ;;  %v1178_v19 = vpack.i.b16 %v1174_v17, %v1149_v14  ;;  %v1181_v21 = vshrl.u32 %v1174_v17, 16 }
 0x340   : > { %v1182_v22 = vpack.i.b16 %v1181_v21, %v1180_v20  ;;  %v1186_v23 = vpack.i.b16 %v1175_v18, %v1150_v16  ;;  %v1189_v25 = vshrl.u32 %v1175_v18, 16  ;;  %1192 = vst.msk [vmem:[#allocation3] sm:$0xf] %vm1014_vm2, %v1178_v19  ;;  %v2852_v21 = vld [vmem:[%s3719_s8 + $0x8] sm:$0xff]  }
 0x342   : > { %v1190_v26 = vpack.i.b16 %v1189_v25, %v1188_v24  ;;  %1193 = vst.msk [vmem:[#allocation3 + $0x4] sm:$0xf] %vm1014_vm2, %v1182_v22  ;;  %1194 = vst.msk [vmem:[#allocation3 + $0x8] sm:$0xf] %vm1014_vm2, %v1186_v23 }
 0x344   : > { %1195 = vst.msk [vmem:[#allocation3 + $0xc] sm:$0xf] %vm1014_vm2, %v1190_v26 }
 0x347   : > { %v1438_v27 = vld [vmem:[#allocation3] sm:$0xf] }
 0x348   : > { %v1689_v47 = vsel %vm1687_vm5, %v1438_v27, 0 }
 0x349   : > { %2675 = vmatpush3.bf16.msra.mxu1 %v1689_v47  ;;  %v1439_v28 = vld [vmem:[#allocation3 + $0x4] sm:$0xf]  ;;  %v1440_v41 = vld [vmem:[#allocation3 + $0x8] sm:$0xf] }
 0x34a   : > { %v1735_v29 = vsel %vm1687_vm5, %v1439_v28, 0  ;;  %2686 = vmatprep.subr.bf16.mxu1 %v3110_v0  ;;  %v1781_v45 = vsel %vm1687_vm5, %v1440_v41, 0 }
 0x34b   : > { %2681 = vmatpush3.bf16.msra.mxu0 %v1735_v29  ;;  %v1441_v44 = vld [vmem:[#allocation3 + $0xc] sm:$0xf] }
 0x34c   : > { %2692 = vmatprep.subr.bf16.mxu0 %v3110_v0 }
 0x3b5   : > { %v1658_v31 = vpop.xlane.xlu1 %1657 }
 0x3b6   : > { %2868 = vrcp.f32 %v1658_v31 }
 0x3b7   : > { %v1661_v32 = vpop.xlane.xlu0 %1660 }
 0x3b8   : > { %2870 = vrcp.f32 %v1661_v32 }
 0x3bd   : > { %v1664_v34 = vpop.xlane.xlu0 %1663 }
 0x3be   : > { %2872 = vrcp.f32 %v1664_v34 }
 0x3c1   : > { %v1667_v36 = vpop.xlane.xlu1 %1666 }
 0x3c2   : > { %2874 = vrcp.f32 %v1667_v36  ;;  %v2853_v36 = vld [vmem:[%s3719_s8] sm:$0xff]  }
 0x3c3   : > { %v2869_v38 = vpop.eup %2868 }
 0x3c4   : > { %v1669_v39 = vmul.f32 %v2869_v38, %v3480_v30  ;;  %v1827_v30 = vsel %vm1687_vm5, %v1441_v44, 0 }
 0x3c5   : > { %v2871_v40 = vpop.eup %2870 }
 0x3c6   : > { %v1680_v42 = vpack.c.bf16 %v1669_v39, %v1669_v39  ;;  %v1671_v43 = vmul.f32 %v2871_v40, %v3486_v35  ;;  %1676 = vst.msk [vmem:[%s3526_s25] sm:$0xff] %vm1631_vm4, %v1669_v39 }
 0x3c8   : > { %2677 = vmatmul.mubr.msk.bf16.vlgmr.msra.gmra.mxu1 %vm1631_vm4, %v1680_v42  ;;  %v1681_v46 = vpack.c.bf16 %v1671_v43, %v1671_v43  ;;  %1677 = vst.msk [vmem:[%s3526_s25 + $0x8] sm:$0xff] %vm1631_vm4, %v1671_v43 }
 0x3c9   : > { %2687 = vmatpush3.bf16.msra.mxu1 %v1781_v45  ;;  %2688 = vmatprep.mubr.msk.bf16.mxu1 %vm3111_vm0, %v3110_v0 }
 0x3ca   : > { %2683 = vmatmul.mubr.msk.bf16.vlgmr.msra.gmra.mxu0 %vm1631_vm4, %v1681_v46  ;;  %2698 = vmatprep.subr.bf16.mxu1 %v3110_v0 }
 0x3cb   : > { %v2873_v35 = vpop.eup %2872  ;;  %2693 = vmatpush3.bf16.msra.mxu0 %v1827_v30  ;;  %2694 = vmatprep.mubr.msk.bf16.mxu0 %vm3111_vm0, %v3110_v0 }
 0x3cc   : > { %v1673_v48 = vmul.f32 %v2873_v35, %v3496_v55  ;;  %2710 = vmatprep.subr.bf16.mxu0 %v3110_v0 }
 0x3ce   : > { %v1682_v49 = vpack.c.bf16 %v1673_v48, %v1673_v48  ;;  %1678 = vst.msk [vmem:[%s3526_s25 + $0x10] sm:$0xff] %vm1631_vm4, %v1673_v48 }
 0x3cf   : > { %v2875_v50 = vpop.eup %2874 }
 0x3d0   : > { %2689 = vmatmul.mubr.msk.bf16.vlgmr.msra.gmra.mxu1 %vm1631_vm4, %v1682_v49  ;;  %v1675_v51 = vmul.f32 %v2875_v50, %v3502_v8 }
 0x3d1   : > { %2706 = vmatprep.mubr.msk.bf16.mxu1 %vm3111_vm0, %v3110_v0  ;;  %2699 = vmatpush3.bf16.msra.mxu1 %v2850_v53 }
 0x3d2   : > { %v1683_v52 = vpack.c.bf16 %v1675_v51, %v1675_v51  ;;  %1679 = vst.msk [vmem:[%s3526_s25 + $0x18] sm:$0xff] %vm1631_vm4, %v1675_v51  ;;  %2700 = vmatprep.subr.bf16.mxu1 %v3110_v0  ;;  %s2992_s25 = scalar_lea.vmem %s2991_s2, 1024 }
 0x3d3   : > { %p2994_p12 = scmp.lt.s32.totalorder %s2992_s25, %s2986_s27 }
 0x3d4   : > { %2695 = vmatmul.mubr.msk.bf16.vlgmr.msra.gmra.mxu0 %vm1631_vm4, %v1683_v52 }
 0x3d5   : > { %2714 = vmatprep.mubr.msk.bf16.mxu0 %vm3111_vm0, %v3110_v0  ;;  %2701 = vmatpush3.bf16.msra.mxu1 %v2851_v54  ;;  %v2560_v54 = vld [vmem:[#allocation10] ss:$0 sm:$0xff]  ;;  %p2995_p1 = por %p2994_p12, %p2993_p9 }
 0x3d6   : > { %2702 = vmatprep.subr.bf16.mxu1 %v3110_v0 }
 0x3d7   : > { %p2996_p2 = pnand %p2995_p1, %p2989_p7 }
 0x3d9   : > { %2703 = vmatpush3.bf16.msra.mxu1 %v2852_v21 }
 0x3da   : > { %2704 = vmatprep.subr.bf16.mxu1 %v3110_v0 }
 0x3dd   : > { %2705 = vmatpush3.bf16.msra.mxu1 %v2853_v36 }
 0x488   : > { %v1725_v55 = vpop.f32.mrf.mxu1 }
 0x48a   : > { %v2678_v56 = vpop.f32.mrf.mxu1  ;;  %v1771_v57 = vpop.f32.mrf.mxu0 }
 0x48c   : > { %v1728_v58 = vpop.f32.mrf.mxu1  ;;  %v2684_v59 = vpop.f32.mrf.mxu0 }
 0x48e   : > { %v2679_v60 = vpop.f32.mrf.mxu1  ;;  %v1774_v61 = vpop.f32.mrf.mxu0 }
 0x490   : > { %v2685_v62 = vpop.f32.mrf.mxu0  ;;  %v1817_v63 = vpop.f32.mrf.mxu1 }
 0x491   : > { %v1869_v2 = vcombine.low %v1725_v55, %v1817_v63  ;;  %v1870_v3 = vcombine.high %v1725_v55, %v1817_v63 }
 0x492   : > { %v2690_v1 = vpop.f32.mrf.mxu1 }
 0x493   : > { %v1877_v11 = vrot.slane %v1869_v2, %v3401_v33  ;;  %v1884_v12 = vrot.slane %v1870_v3, %v3401_v33 }
 0x494   : > { %v1820_v4 = vpop.f32.mrf.mxu1  ;;  %v1863_v5 = vpop.f32.mrf.mxu0 }
 0x495   : > { %v1885_v7 = vcombine.low %v1771_v57, %v1863_v5  ;;  %v1886_v8 = vcombine.high %v1771_v57, %v1863_v5  ;;  %v2854_v4 = vld [vmem:[%s3723_s12 + $0x8] sm:$0xff]  }
 0x496   : > { %v2691_v9 = vpop.f32.mrf.mxu1  ;;  %v2696_v10 = vpop.f32.mrf.mxu0  ;;  %2711 = vmatpush3.bf16.msra.mxu0 %v2854_v4 }
 0x497   : > { %v1893_v13 = vrot.slane %v1885_v7, %v3401_v33  ;;  %v1900_v14 = vrot.slane %v1886_v8, %v3401_v33  ;;  %2712 = vmatprep.subr.bf16.mxu0 %v3110_v0  ;;  %v2566_v10 = vld [vmem:[%s3721_s10] ss:$0 sm:$0xff] }
 0x498   : > { %v1866_v15 = vpop.f32.mrf.mxu0 }
 0x499   : > { %v1901_v16 = vcombine.low %v1877_v11, %v1893_v13  ;;  %v1902_v17 = vcombine.high %v1877_v11, %v1893_v13  ;;  %v1917_v18 = vcombine.low %v1884_v12, %v1900_v14  ;;  %v1918_v19 = vcombine.high %v1884_v12, %v1900_v14  ;;  %v2567_v12 = vld [vmem:[%s3722_s11] ss:$0 sm:$0xff] }
 0x49a   : > { %v2697_v20 = vpop.f32.mrf.mxu0 }
 0x49b   : > { %v1909_v22 = vrot.slane %v1901_v16, %v3404_v37  ;;  %v1916_v23 = vrot.slane %v1902_v17, %v3404_v37  ;;  %v1925_v24 = vrot.slane %v1917_v18, %v3404_v37  ;;  %v1932_v25 = vrot.slane %v1918_v19, %v3404_v37  ;;  %v2856_v16 = vld [vmem:[%s3725_s14 + $0x18] sm:$0xff]   ;;  %v2857_v17 = vld [vmem:[%s3725_s14 + $0x10] sm:$0xff]   ;;  %v2858_v18 = vld [vmem:[%s3725_s14 + $0x8] sm:$0xff]  }
 0x49c   : > { %v2859_v19 = vld [vmem:[%s3725_s14] sm:$0xff]  }
 0x49d   : > { %v1937_v26 = vcombine.low %v1909_v22, %v1916_v23  ;;  %v2558_v27 = vcombine.high %v1909_v22, %v1916_v23  ;;  %v1953_v47 = vcombine.low %v1925_v24, %v1932_v25  ;;  %v2559_v28 = vcombine.high %v1925_v24, %v1932_v25  ;;  %v2568_v20 = vld [vmem:[%s3724_s13] ss:$0 sm:$0xff] }
 0x49f   : > { %v1944_v29 = vrot.slane %v1937_v26, %v3401_v33  ;;  %v1952_v31 = vrot.slane %v2558_v27, %v3401_v33  ;;  %v1960_v32 = vrot.slane %v1953_v47, %v3401_v33  ;;  %v1968_v34 = vrot.slane %v2559_v28, %v3401_v33 }
 0x4a1   : > { %v1970_v38 = vcombine.high %v1944_v29, %v1952_v31  ;;  %v1986_v39 = vcombine.high %v1960_v32, %v1968_v34  ;;  %v1969_v40 = vcombine.low %v1944_v29, %v1952_v31  ;;  %v1985_v41 = vcombine.low %v1960_v32, %v1968_v34 }
 0x4a3   : > { %v1984_v42 = vrot.slane %v1970_v38, %v3404_v37  ;;  %v2000_v43 = vrot.slane %v1986_v39, %v3404_v37  ;;  %v1977_v44 = vrot.slane %v1969_v40, %v3404_v37  ;;  %v1993_v45 = vrot.slane %v1985_v41, %v3404_v37  ;;  %v2572_v38 = vld [vmem:[%s3726_s15] ss:$0 sm:$0xff] }
 0x4a5   : > { %v2003_v46 = vcombine.low %v1984_v42, %v2000_v43  ;;  %v2002_v30 = vcombine.high %v1977_v44, %v1993_v45  ;;  %v2001_v33 = vcombine.low %v1977_v44, %v1993_v45  ;;  %v2004_v35 = vcombine.high %v1984_v42, %v2000_v43 }
 0x4a7   : > { %2010 = vrot.lane.b32.xlu1 %v2003_v46, %s3118_s20  ;;  %2006 = vrot.lane.b32.xlu0 %v2002_v30, %s3119_s28  ;;  %s3639_s28 = scalar_lea.hbm %s3730_s19, %s2587_s9 }
 0x4ab   : > { %2014 = vrot.lane.b32.xlu1 %v2004_v35, %s3120_s26  ;;  %s2332_s26 = scalar_lea.sflag [#allocation14], %s3521_s1 }
 0x519   : > { %v2011_v48 = vpop.permute.xlu1 %2010  ;;  %v2007_v49 = vpop.permute.xlu0 %2006 }
 0x51a   : > { %v2017_v50 = vsel %vm1442_vm3, %v2001_v33, %v2007_v49 }
 0x51b   : > { %v2018_v52 = vsel %vm734_vm1, %v2017_v50, %v2011_v48 }
 0x51d   : > { %v2015_v51 = vpop.permute.xlu1 %2014 }
 0x51e   : > { %v2020_v53 = vsel %vm2019_vm6, %v2018_v52, %v2015_v51 }
 0x51f   : > { %v2021_v37 = vpack.c.bf16 %v2020_v53, %v2020_v53 }
 0x521   : > { %2707 = vmatmul.mubr.msk.bf16.vlgmr.msra.gmra.mxu1 %vm2061_vm7, %v2021_v37 }
 0x5e1   : > { %v2099_v55 = vpop.f32.mrf.mxu1 }
 0x5e2   : > { %v2100_v56 = vadd.f32 %v2560_v54, %v2099_v55 }
 0x5e3   : > { %v2708_v57 = vpop.f32.mrf.mxu1 }
 0x5e4   : > { %v2105_v58 = vadd.f32 %v2100_v56, %v3371_v6  ;;  %v2855_v6 = vld [vmem:[%s3723_s12] sm:$0xff]  }
 0x5e5   : > { %v2102_v59 = vpop.f32.mrf.mxu1  ;;  %2713 = vmatpush3.bf16.msra.mxu0 %v2855_v6 }
 0x5e6   : > { %v2108_v60 = vsel %vm734_vm1, %v2105_v58, 0.0  ;;  %2718 = vmatprep.subr.bf16.mxu0 %v3110_v0 }
 0x5e7   : > { %2109 = vadd.xlane.f32.xlu0 %v2108_v60  ;;  %v2709_v61 = vpop.f32.mrf.mxu1 }
 0x670   : > { %v2110_v62 = vpop.xlane.xlu0 %2109 }
 0x671   : > { %v2112_v63 = vmul.f32 0.03125, %v2110_v62 }
 0x673   : > { %v2113_v1 = vsub.f32 %v2105_v58, %v2112_v63 }
 0x675   : > { %v2114_v2 = vmul.f32 %v2113_v1, %v2113_v1 }
 0x677   : > { %v2115_v3 = vsel %vm734_vm1, %v2114_v2, 0.0 }
 0x678   : > { %2116 = vadd.xlane.f32.xlu1 %v2115_v3 }
 0x701   : > { %v2117_v5 = vpop.xlane.xlu1 %2116 }
 0x702   : > { %v2118_v7 = vmul.f32 0.03125, %v2117_v5 }
 0x704   : > { %v2119_v8 = vadd.f32 1e-05, %v2118_v7 }
 0x706   : > { %2876 = vrsqrt.f32 %v2119_v8 }
 0x713   : > { %v2877_v9 = vpop.eup %2876 }
 0x714   : > { %v2121_v11 = vmul.f32 %v2877_v9, %v2113_v1 }
 0x716   : > { %v2128_v13 = vmul.f32 %v2566_v10, %v2121_v11 }
 0x718   : > { %v2135_v14 = vadd.f32 %v2567_v12, %v2128_v13 }
 0x71a   : > { %v2136_v15 = vpack.c.bf16 %v2135_v14, %v2135_v14 }
 0x71c   : > { %2715 = vmatmul.mubr.msk.bf16.vlgmr.msra.gmra.mxu0 %vm734_vm1, %v2136_v15 }
 0x71d   : > { %2726 = vmatprep.mubr.msk.bf16.mxu0 %vm3111_vm0, %v3110_v0  ;;  %2719 = vmatpush3.bf16.msra.mxu0 %v2856_v16 }
 0x71e   : > { %2720 = vmatprep.subr.bf16.mxu0 %v3110_v0 }
 0x721   : > { %2721 = vmatpush3.bf16.msra.mxu0 %v2857_v17 }
 0x722   : > { %2722 = vmatprep.subr.bf16.mxu0 %v3110_v0 }
 0x725   : > { %2723 = vmatpush3.bf16.msra.mxu0 %v2858_v18 }
 0x726   : > { %2724 = vmatprep.subr.bf16.mxu0 %v3110_v0 }
 0x729   : > { %2725 = vmatpush3.bf16.msra.mxu0 %v2859_v19 }
 0x7dc   : > { %v2197_v21 = vpop.f32.mrf.mxu0 }
 0x7dd   : > { %v2198_v22 = vadd.f32 %v2568_v20, %v2197_v21 }
 0x7de   : > { %v2716_v23 = vpop.f32.mrf.mxu0 }
 0x7df   : > { %v2204_v24 = vmul.f32 0.044715, %v2198_v22  ;;  %v2203_v32 = vmul.f32 0.5, %v2198_v22 }
 0x7e0   : > { %v2200_v25 = vpop.f32.mrf.mxu0 }
 0x7e1   : > { %v2205_v26 = vmul.f32 %v2204_v24, %v2198_v22 }
 0x7e2   : > { %v2717_v27 = vpop.f32.mrf.mxu0 }
 0x7e3   : > { %v2206_v47 = vmul.f32 %v2205_v26, %v2198_v22 }
 0x7e5   : > { %v2207_v28 = vadd.f32 %v2206_v47, %v2198_v22 }
 0x7e7   : > { %v2208_v29 = vmul.f32 0.7978846, %v2207_v28 }
 0x7e9   : > { %2878 = vtanh.f32 %v2208_v29 }
 0x7f6   : > { %v2879_v31 = vpop.eup %2878 }
 0x7f7   : > { %v2210_v34 = vadd.f32 1.0, %v2879_v31 }
 0x7f9   : > { %v2211_v0 = vmul.f32 %v2210_v34, %v2203_v32 }
 0x7fb   : > { %v2212_v36 = vpack.c.bf16 %v2211_v0, %v2211_v0 }
 0x7fd   : > { %2727 = vmatmul.mubr.msk.bf16.vlgmr.msra.gmra.mxu0 %vm2061_vm7, %v2212_v36 }
 0x8bd   : > { %v2289_v39 = vpop.f32.mrf.mxu0 }
 0x8be   : > { %v2290_v40 = vadd.f32 %v2572_v38, %v2289_v39 }
 0x8bf   : > { %v2728_v41 = vpop.f32.mrf.mxu0 }
 0x8c0   : > { %v2295_v42 = vadd.f32 %v2290_v40, %v2135_v14 }
 0x8c1   : > { %v2292_v43 = vpop.f32.mrf.mxu0 }
 0x8c2   : > { %v2298_v44 = vsel %vm734_vm1, %v2295_v42, 0.0 }
 0x8c3   : > { %2299 = vadd.xlane.f32.xlu0 %v2298_v44  ;;  %v2729_v45 = vpop.f32.mrf.mxu0 }
 0x94c   : > { %v2300_v46 = vpop.xlane.xlu0 %2299 }
 0x94d   : > { %v2301_v30 = vmul.f32 0.03125, %v2300_v46 }
 0x94f   : > { %v2302_v33 = vsub.f32 %v2295_v42, %v2301_v30 }
 0x951   : > { %v2303_v35 = vmul.f32 %v2302_v33, %v2302_v33 }
 0x953   : > { %v2304_v48 = vsel %vm734_vm1, %v2303_v35, 0.0 }
 0x954   : > { %2305 = vadd.xlane.f32.xlu0 %v2304_v48 }
 0x955   : > { %2999 = shalt.err (!%p2996_p2)
}
 0x956   : > { %s3000_s18 = scalar_lea.hbm %s3639_s28, 512  ;;  %s3004_s0 = scalar_lea.hbm %s3730_s19, 1024 }
 0x957   : > { %p3001_p5 = scmp.ne.s32.totalorder %s3639_s28, %s3000_s18  ;;  %p3005_p4 = scmp.lt.s32.totalorder %s3639_s28, %s3730_s19 }
 0x958   : > { %p3006_p11 = scmp.lt.s32.totalorder %s3004_s0, %s3000_s18 }
 0x959   : > { %p3002_p8 = pnand %p3001_p5, %p3771_p0 }
 0x95a   : > { %p3007_p10 = por %p3006_p11, %p3005_p4 }
 0x95b   : > { %p3003_p3 = pneg %p3002_p8 }
 0x95d   : > { %p3008_p13 = pnand %p3007_p10, %p3003_p3 }
 0x95f   : > { %3011 = shalt.err (!%p3008_p13)
}
 0x960   : > { %s3122_s20 = smov 128   ;;  %s3123_s27 = smov 8   ;;  %v2578_v53 = vld [vmem:[%s3727_s16] ss:$0 sm:$0xff] }
 0x961   : > { %2747 = dma.vmem_to_hbm [thread:$0]  (%p3771_p0), %s3634_s7, 512, %s3639_s28, %s2332_s26, %s3122_s20, %s3122_s20, %s3123_s27  }
 0x962   : > { %s2534_s22 = sshll.u32 %s3521_s1, 3  ;;  %v2579_v54 = vld [vmem:[%s3728_s17] ss:$0 sm:$0xff]  ;;  %s2582_s29 = sshll.u32 %s3096_s21, 7 }
 0x963   : > { %s685_s0 = scalar_lea.vmem [#allocation12], %s2534_s22  ;;  %s3772_s9 = sld [smem:[#allocation34_spill]] }
 0x964   : > { %s2346_s7 = sshll.u32 %s685_s0, 4  ;;  %s2327_s20 = scalar_lea.sflag [#allocation6], %s3521_s1  ;;  %s2347_s7 = int_to_ptr.vmem [resolvable:$true] %s2346_s7 }
 0x965   : > { %s3012_s27 = scalar_lea.vmem %s2347_s7, 128  ;;  %s3124_s2 = smov [#allocation12]  }
 0x966   : > { %p3013_p6 = scmp.ne.s32.totalorder %s2347_s7, %s3012_s27  ;;  %s3016_s25 = sshll.u32 %s3124_s2, 4  ;;  %s3017_s25 = int_to_ptr.vmem [resolvable:$false] %s3016_s25 }
 0x967   : > { %s3018_s21 = scalar_lea.vmem %s3017_s25, 256  ;;  %p3019_p12 = scmp.lt.s32.totalorder %s2347_s7, %s3017_s25 }
 0x968   : > { %p3014_p7 = pnand %p3013_p6, %p3771_p0  ;;  %p3020_p1 = scmp.lt.s32.totalorder %s3018_s21, %s3012_s27 }
 0x969   : > { %s2344_s24 = scalar_lea.hbm %s3772_s9, %s2582_s29 }
 0x96a   : > { %p3015_p9 = pneg %p3014_p7  ;;  %p3021_p2 = por %p3020_p1, %p3019_p12 }
 0x96c   : > { %p3022_p5 = pnand %p3021_p2, %p3015_p9 }
 0x9dd   : > { %v2306_v49 = vpop.xlane.xlu0 %2305 }
 0x9de   : > { %v2307_v50 = vmul.f32 0.03125, %v2306_v49 }
 0x9e0   : > { %v2308_v51 = vadd.f32 1e-05, %v2307_v50 }
 0x9e2   : > { %2880 = vrsqrt.f32 %v2308_v51 }
 0x9ef   : > { %v2881_v52 = vpop.eup %2880 }
 0x9f0   : > { %v2310_v37 = vmul.f32 %v2881_v52, %v2302_v33 }
 0x9f2   : > { %v2317_v55 = vmul.f32 %v2578_v53, %v2310_v37 }
 0x9f4   : > { %v2324_v56 = vadd.f32 %v2579_v54, %v2317_v55 }
 0x9f6   : > { %2325 = vst.msk [vmem:[%s685_s0] sm:$0xff] %vm734_vm1, %v2324_v56 }
 0x9f7   : > { %3025 = shalt.err (!%p3022_p5)
}
 0x9f8   : > { %s3026_s22 = scalar_lea.hbm %s2344_s24, 128  ;;  %s3030_s23 = scalar_lea.hbm %s3772_s9, 256 }
 0x9f9   : > { %p3027_p8 = scmp.ne.s32.totalorder %s2344_s24, %s3026_s22  ;;  %p3031_p11 = scmp.lt.s32.totalorder %s2344_s24, %s3772_s9 }
 0x9fa   : > { %p3032_p10 = scmp.lt.s32.totalorder %s3030_s23, %s3026_s22 }
 0x9fb   : > { %p3028_p3 = pnand %p3027_p8, %p3771_p0 }
 0x9fc   : > { %p3033_p13 = por %p3032_p10, %p3031_p11 }
 0x9fd   : > { %p3029_p4 = pneg %p3028_p3 }
 0x9ff   : > { %p3034_p6 = pnand %p3033_p13, %p3029_p4 }
 0xa01   : > { %3037 = shalt.err (!%p3034_p6)
}
 0xa02   : > { %2746 = dma.vmem_to_hbm [thread:$0]  (%p3771_p0), %s2347_s7, 128, %s2344_s24, %s2327_s20  }
 0xa03 PF: > { %s3773_s28 = sld [smem:[#allocation23_spill]] }
 0xa04   : > { %s3774_s26 = sld [smem:[#allocation20_spill]] }
 0xa05   : > { %s3775_s27 = sld [smem:[#allocation25_spill]] }
 0xa09   : > { %p2778_p7 = scmp.ge.s32.totalorder %s3773_s28, 2 }
 0xa0a   : > { %s2375_s2 = sand.u32 1, %s3774_s26  }
 0xa0b   : > { %p3776_p9 = scmp.ne.s32.totalorder %s3775_s27, 0  ;;  %s2376_s25 = scalar_lea.sflag [#allocation6], %s2375_s2 }
 0xa0d   : > { %p2764_p12 = pnand %p2778_p7, %p3776_p9 }
 0xa0f   : > { %p2765_p1 = pneg %p2764_p12 }
 0xa11   : > { %3075 = dma.done.wait (%p2765_p1), %s2376_s25, 128  }
 0xa12   : > { %3077 = vsyncadd (%p2765_p1), %s2376_s25, 4294967168  ;;  %s2385_s21 = scalar_lea.sflag [#allocation14], %s2375_s2 }
 0xa13   : > { %3079 = dma.done.wait (%p2765_p1), %s2385_s21, 512  }
 0xa14   : > { %3081 = vsyncadd (%p2765_p1), %s2385_s21, 4294966784  ;;  %s39_s22 = sadd.s32 1, %s3773_s28   ;;  %s3777_s3 = sld [smem:[#allocation21_spill]] }
 0xa15   : > { %p36_p2 = scmp.ge.s32.totalorder %s39_s22, 4   ;;  %s3778_s20 = sld [smem:[#allocation26_spill]] }
 0xa16   : > { %s3779_s21 = sld [smem:[#allocation22_spill]]  ;;  %s3781_s0 = smov %s3088_s30 }
 0xa17   : > { %s3780_s1 = sld [smem:[#allocation24_spill]]  ;;  %38 = sbr.rel (!%p36_p2) target bundleno = 18 (0x12), region = 168 }
 0xa1a   : > { %s3782_s30 = smov %s3777_s3 }
 0xa1c   :  { %2390 = vsyncpa [#allocation5], 1 }
 0xa1d   :  { %2392 = vsyncpa [#allocation5 + $0x1], 1 }
 0xa1e   :  { %2393 = vsyncpa [#allocation8], 1 }
 0xa1f   :  { %2394 = vsyncpa [#allocation11], 1 }
 0xa20   :  { %2395 = vsyncpa [#allocation6], 1 }
 0xa21   :  { %2397 = vsyncpa [#allocation6 + $0x1], 1 }
 0xa22   :  { %2398 = vsyncpa [#allocation14], 1 }
 0xa23   :  { %2400 = vsyncpa [#allocation14 + $0x1], 1 }

</bundles_post_ra>
